<compile_context>
chip_gen: v6e
topology: v6e:2x2x1
jax: 0.10.0
libtpu: 0.0.40
codegen_flags: <defaults>
</compile_context>

<pallas_src>
import functools
import math

import jax
import jax.numpy as jnp
from jax import lax
from jax.experimental import pallas as pl
from jax.experimental.pallas import tpu as pltpu


LN_EPS = 1e-5


def _layernorm(x, w, b):
    # x: (R, D) f32, w/b: (1, D) f32 -> (R, D) f32
    mean = jnp.mean(x, axis=-1, keepdims=True)
    xc = x - mean
    var = jnp.mean(xc * xc, axis=-1, keepdims=True)
    inv = lax.rsqrt(var + LN_EPS)
    return xc * inv * w + b


def _gelu_exact(x):
    # PyTorch nn.GELU() default (erf-based, exact); kept in f32 (v5e-friendly).
    return 0.5 * x * (1.0 + lax.erf(x * (1.0 / math.sqrt(2.0))))


def _block_kernel(x_ref,
                  ln1_w_ref, ln1_b_ref, w_qkv_ref, w_out_ref, b_out_ref,
                  ln2_w_ref, ln2_b_ref, w_ff1_ref, b_ff1_ref, w_ff2_ref, b_ff2_ref,
                  o_ref,
                  *, heads, dim_head, q_tile, single_q_tile, compute_dtype):
    """One transformer block for one (batch, query-tile) grid point."""
    inner = heads * dim_head
    scale = dim_head ** -0.5
    mm_dt = compute_dtype  # matmul-input dtype (f32 default; bf16 for v6e/v7x)

    x_full = x_ref[...]                      # (N, D) f32 (batch dim squeezed)
    n_kv = x_full.shape[0]

    ln1_w = ln1_w_ref[...]
    ln1_b = ln1_b_ref[...]

    # ---- PreNorm + Attention (QKV projections) -----------------------------
    if single_q_tile:
        # Whole sequence is one query tile: one fused QKV matmul.
        x_q = x_full                                          # (N, D)
        xn = _layernorm(x_full, ln1_w, ln1_b)                 # (N, D)
        qkv = jnp.dot(xn.astype(mm_dt), w_qkv_ref[...].astype(mm_dt),
                      preferred_element_type=jnp.float32)     # (N, 3*inner)
        q = qkv[:, 0 * inner:1 * inner]
        k = qkv[:, 1 * inner:2 * inner]
        v = qkv[:, 2 * inner:3 * inner]
    else:
        row0 = pl.multiple_of(pl.program_id(1) * q_tile, q_tile)
        x_q = x_ref[pl.ds(row0, q_tile), :]                   # (TQ, D)
        xn_kv = _layernorm(x_full, ln1_w, ln1_b)              # (N, D)
        xn_q = _layernorm(x_q, ln1_w, ln1_b)                  # (TQ, D)
        q = jnp.dot(xn_q.astype(mm_dt),
                    w_qkv_ref[:, 0:inner].astype(mm_dt),
                    preferred_element_type=jnp.float32)       # (TQ, inner)
        kv = jnp.dot(xn_kv.astype(mm_dt),
                     w_qkv_ref[:, inner:3 * inner].astype(mm_dt),
                     preferred_element_type=jnp.float32)      # (N, 2*inner)
        k = kv[:, 0:inner]
        v = kv[:, inner:2 * inner]

    tq = x_q.shape[0]

    # Pre-scale q (TQ*inner elements) rather than the (h, TQ, N) score tensor.
    q = q * scale

    q3 = q.reshape(tq, heads, dim_head)
    k3 = k.reshape(n_kv, heads, dim_head)
    v3 = v.reshape(n_kv, heads, dim_head)

    # One batched matmul over all heads (heads = dot_general batch dimension).
    dots = jnp.einsum("qhd,khd->hqk", q3.astype(mm_dt), k3.astype(mm_dt),
                      preferred_element_type=jnp.float32)     # (h, TQ, N)
    dots = dots - jnp.max(dots, axis=-1, keepdims=True)       # f32 stats
    e = jnp.exp(dots)
    denom = jnp.sum(e, axis=-1, keepdims=True)                # (h, TQ, 1)

    # attn @ V in the natural batch-first layout, then normalize the (h,TQ,d)
    # result (cheaper than normalizing (h,TQ,N) when N > dim_head), then a
    # single head->feature transpose.
    pv = jnp.einsum("hqk,khd->hqd", e.astype(mm_dt), v3.astype(mm_dt),
                    preferred_element_type=jnp.float32)       # (h, TQ, d)
    inv = pl.reciprocal(denom, approx=True)                   # EUP rcp
    out = jnp.transpose(pv * inv, (1, 0, 2)).reshape(tq, inner)

    attn_out = jnp.dot(out.astype(mm_dt), w_out_ref[...].astype(mm_dt),
                       preferred_element_type=jnp.float32) + b_out_ref[...]
    x_t = x_q + attn_out                                      # residual in f32

    # ---- PreNorm + FeedForward --------------------------------------------
    xn2 = _layernorm(x_t, ln2_w_ref[...], ln2_b_ref[...])
    h1 = jnp.dot(xn2.astype(mm_dt), w_ff1_ref[...].astype(mm_dt),
                 preferred_element_type=jnp.float32) + b_ff1_ref[...]
    h1 = _gelu_exact(h1)
    ff = jnp.dot(h1.astype(mm_dt), w_ff2_ref[...].astype(mm_dt),
                 preferred_element_type=jnp.float32) + b_ff2_ref[...]

    o_ref[...] = (x_t + ff).astype(o_ref.dtype)


def transformer_block_pallas(x, params, *, heads, dim_head, q_tile=None,
                             compute_dtype=jnp.float32):
    """x: (B, N, D) float32.  Returns (B, N, D) float32."""
    B, N, D = x.shape
    inner = heads * dim_head
    mlp_dim = params["w_ff1"].shape[1]

    if q_tile is None:
        q_tile = min(N, 128)
    assert N % q_tile == 0, "sequence length must be divisible by q_tile"
    n_q_tiles = N // q_tile

    kernel = functools.partial(_block_kernel, heads=heads, dim_head=dim_head,
                               q_tile=q_tile, single_q_tile=(n_q_tiles == 1),
                               compute_dtype=compute_dtype)

    def full(shape):
        return pl.BlockSpec(shape, lambda b, qi: (0,) * len(shape))

    grid_spec = pltpu.PrefetchScalarGridSpec(
        num_scalar_prefetch=0,
        grid=(B, n_q_tiles),
        in_specs=[
            # x: full sequence per step (needed for K/V); batch dim squeezed.
            pl.BlockSpec((None, N, D), lambda b, qi: (b, 0, 0)),
            full((1, D)),            # ln1_w
            full((1, D)),            # ln1_b
            full((D, 3 * inner)),    # w_qkv
            full((inner, D)),        # w_out
            full((1, D)),            # b_out
            full((1, D)),            # ln2_w
            full((1, D)),            # ln2_b
            full((D, mlp_dim)),      # w_ff1
            full((1, mlp_dim)),      # b_ff1
            full((mlp_dim, D)),      # w_ff2
            full((1, D)),            # b_ff2
        ],
        # Lane-dense output tile: last dim D (multiple of 128 at call site).
        out_specs=pl.BlockSpec((None, q_tile, D), lambda b, qi: (b, qi, 0)),
    )

    # Advisory cost estimate for XLA's scheduler (per layer / per pallas_call).
    flops = 2 * B * N * (D * 3 * inner + 2 * N * inner + inner * D
                         + 2 * D * mlp_dim)
    transcendentals = B * N * (heads * N + mlp_dim)
    param_bytes = sum(int(p.size) * p.dtype.itemsize for p in params.values())
    bytes_accessed = 2 * int(x.size) * x.dtype.itemsize + param_bytes
    cost = pl.CostEstimate(flops=int(flops),
                           transcendentals=int(transcendentals),
                           bytes_accessed=int(bytes_accessed))

    return pl.pallas_call(
        kernel,
        out_shape=jax.ShapeDtypeStruct((B, N, D), jnp.float32),
        grid_spec=grid_spec,
        compiler_params=pltpu.CompilerParams(
            dimension_semantics=("parallel", "parallel"),
            vmem_limit_bytes=64 * 1024 * 1024),
        cost_estimate=cost,
    )(x,
      params["ln1_w"], params["ln1_b"], params["w_qkv"], params["w_out"],
      params["b_out"], params["ln2_w"], params["ln2_b"], params["w_ff1"],
      params["b_ff1"], params["w_ff2"], params["b_ff2"])


def transformer_pallas(x, layers, *, heads, dim_head, q_tile=None,
                       compute_dtype=jnp.float32):
    for params in layers:
        x = transformer_block_pallas(x, params, heads=heads, dim_head=dim_head,
                                     q_tile=q_tile, compute_dtype=compute_dtype)
    return x


# ------------------- pure-JAX reference (for verification) -------------------
def _ref_block(x, p, heads, dim_head):
    inner = heads * dim_head
    scale = dim_head ** -0.5
    B, N, D = x.shape

    def ln(t, w, b):
        m = jnp.mean(t, axis=-1, keepdims=True)
        v = jnp.mean((t - m) ** 2, axis=-1, keepdims=True)
        return (t - m) / jnp.sqrt(v + LN_EPS) * w[0] + b[0]

    xn = ln(x, p["ln1_w"], p["ln1_b"])
    qkv = xn @ p["w_qkv"]
    q, k, v = jnp.split(qkv, 3, axis=-1)
    reshp = lambda t: t.reshape(B, N, heads, dim_head).transpose(0, 2, 1, 3)
    q, k, v = reshp(q), reshp(k), reshp(v)
    dots = jnp.einsum("bhid,bhjd->bhij", q, k) * scale
    attn = jax.nn.softmax(dots, axis=-1)
    out = jnp.einsum("bhij,bhjd->bhid", attn, v)
    out = out.transpose(0, 2, 1, 3).reshape(B, N, inner)
    x = x + (out @ p["w_out"] + p["b_out"][0])

    xn2 = ln(x, p["ln2_w"], p["ln2_b"])
    pre = xn2 @ p["w_ff1"] + p["b_ff1"][0]
    h1 = 0.5 * pre * (1.0 + lax.erf(pre / math.sqrt(2.0)))
    x = x + (h1 @ p["w_ff2"] + p["b_ff2"][0])
    return x


def transformer_ref(x, layers, *, heads, dim_head):
    for p in layers:
        x = _ref_block(x, p, heads, dim_head)
    return x


# ------------------------------- main ---------------------------------------
if __name__ == "__main__":
    # Small but lane-dense shapes: D, inner, 3*inner, mlp_dim are 128-multiples.
    B, N = 2, 16
    dim = 128
    depth = 2
    heads, dim_head = 4, 32
    inner = heads * dim_head        # 128
    mlp_dim = 256

    key = jax.random.PRNGKey(0)
    key, xk = jax.random.split(key)
    x = jax.random.normal(xk, (B, N, dim), dtype=jnp.float32)

    layers = []
    for _ in range(depth):
        key, *ks = jax.random.split(key, 7)
        layers.append({
            "ln1_w": jnp.ones((1, dim), jnp.float32),
            "ln1_b": jnp.zeros((1, dim), jnp.float32),
            "w_qkv": 0.05 * jax.random.normal(ks[0], (dim, 3 * inner), jnp.float32),
            "w_out": 0.05 * jax.random.normal(ks[1], (inner, dim), jnp.float32),
            "b_out": 0.05 * jax.random.normal(ks[2], (1, dim), jnp.float32),
            "ln2_w": jnp.ones((1, dim), jnp.float32),
            "ln2_b": jnp.zeros((1, dim), jnp.float32),
            "w_ff1": 0.05 * jax.random.normal(ks[3], (dim, mlp_dim), jnp.float32),
            "b_ff1": 0.05 * jax.random.normal(ks[4], (1, mlp_dim), jnp.float32),
            "w_ff2": 0.05 * jax.random.normal(ks[5], (mlp_dim, dim), jnp.float32),
            "b_ff2": jnp.zeros((1, dim), jnp.float32),
        })

    ref = transformer_ref(x, layers, heads=heads, dim_head=dim_head)

    # 1) f32 matmuls, tiled query axis (q_tile=8 -> grid (B, 2)): exercises the
    #    multi-tile code path.  Tolerance covers the EUP approx-reciprocal
    #    softmax normalization.
    out = transformer_pallas(x, layers, heads=heads, dim_head=dim_head,
                             q_tile=8, compute_dtype=jnp.float32)
    out = jax.block_until_ready(out)
    assert out.shape == (B, N, dim)
    assert jnp.allclose(out, ref, atol=5e-3, rtol=5e-3), \
        "f32 tiled kernel mismatch vs pure-JAX reference"

    # 2) f32 matmuls, single-tile fast path (fused QKV matmul).
    out_single = transformer_pallas(x, layers, heads=heads, dim_head=dim_head,
                                    compute_dtype=jnp.float32)
    out_single = jax.block_until_ready(out_single)
    assert jnp.allclose(out_single, ref, atol=5e-3, rtol=5e-3), \
        "f32 single-tile kernel mismatch vs pure-JAX reference"

    # 3) bf16 matmul inputs (v6e/v7x MXU path); f32 accumulation + f32
    #    LN/softmax/residual.  Loose sanity check only — reduced precision.
    out_bf16 = transformer_pallas(x, layers, heads=heads, dim_head=dim_head,
                                  compute_dtype=jnp.bfloat16)
    out_bf16 = jax.block_until_ready(out_bf16)
    assert jnp.allclose(out_bf16, ref, atol=5e-2, rtol=5e-2), \
        "bf16-matmul kernel diverged from reference"

    print("KERNEL_OK")
</pallas_src>

<mosaic_0001>
module attributes {stable_mosaic.version = 11 : i64} {
  func.func @_block_kernel(%arg0: i32, %arg1: i32, %arg2: memref<1x16x128xf32, #tpu.memory_space<vmem>>, %arg3: memref<1x128xf32, #tpu.memory_space<vmem>>, %arg4: memref<1x128xf32, #tpu.memory_space<vmem>>, %arg5: memref<128x384xf32, #tpu.memory_space<vmem>>, %arg6: memref<128x128xf32, #tpu.memory_space<vmem>>, %arg7: memref<1x128xf32, #tpu.memory_space<vmem>>, %arg8: memref<1x128xf32, #tpu.memory_space<vmem>>, %arg9: memref<1x128xf32, #tpu.memory_space<vmem>>, %arg10: memref<128x256xf32, #tpu.memory_space<vmem>>, %arg11: memref<1x256xf32, #tpu.memory_space<vmem>>, %arg12: memref<256x128xf32, #tpu.memory_space<vmem>>, %arg13: memref<1x128xf32, #tpu.memory_space<vmem>>, %arg14: memref<1x8x128xf32, #tpu.memory_space<vmem>>) attributes {dimension_semantics = [#tpu.dimension_semantics<parallel>, #tpu.dimension_semantics<parallel>], iteration_bounds = array<i64: 2, 2>, scalar_prefetch = 0 : i64, scratch_operands = 0 : i64, tpu.core_type = #tpu.core_type<tc>, window_params = [{transform_indices = @transform_0, window_bounds = array<i64: 1, 16, 128>}, {pipeline_mode = #tpu.pipeline_mode<synchronous>, transform_indices = @transform_1, window_bounds = array<i64: 1, 128>}, {pipeline_mode = #tpu.pipeline_mode<synchronous>, transform_indices = @transform_2, window_bounds = array<i64: 1, 128>}, {pipeline_mode = #tpu.pipeline_mode<synchronous>, transform_indices = @transform_3, window_bounds = array<i64: 128, 384>}, {pipeline_mode = #tpu.pipeline_mode<synchronous>, transform_indices = @transform_4, window_bounds = array<i64: 128, 128>}, {pipeline_mode = #tpu.pipeline_mode<synchronous>, transform_indices = @transform_5, window_bounds = array<i64: 1, 128>}, {pipeline_mode = #tpu.pipeline_mode<synchronous>, transform_indices = @transform_6, window_bounds = array<i64: 1, 128>}, {pipeline_mode = #tpu.pipeline_mode<synchronous>, transform_indices = @transform_7, window_bounds = array<i64: 1, 128>}, {pipeline_mode = #tpu.pipeline_mode<synchronous>, transform_indices = @transform_8, window_bounds = array<i64: 128, 256>}, {pipeline_mode = #tpu.pipeline_mode<synchronous>, transform_indices = @transform_9, window_bounds = array<i64: 1, 256>}, {pipeline_mode = #tpu.pipeline_mode<synchronous>, transform_indices = @transform_10, window_bounds = array<i64: 256, 128>}, {pipeline_mode = #tpu.pipeline_mode<synchronous>, transform_indices = @transform_11, window_bounds = array<i64: 1, 128>}, {transform_indices = @transform_12, window_bounds = array<i64: 1, 8, 128>}]} {
    %c0 = arith.constant 0 : index
    %c0_0 = arith.constant 0 : index
    %c0_1 = arith.constant 0 : index
    %0 = vector.load %arg2[%c0, %c0_0, %c0_1] : memref<1x16x128xf32, #tpu.memory_space<vmem>>, vector<1x16x128xf32>
    %1 = vector.shape_cast %0 : vector<1x16x128xf32> to vector<16x128xf32>
    %c0_2 = arith.constant 0 : index
    %c0_3 = arith.constant 0 : index
    %2 = vector.load %arg3[%c0_2, %c0_3] : memref<1x128xf32, #tpu.memory_space<vmem>>, vector<1x128xf32>
    %c0_4 = arith.constant 0 : index
    %c0_5 = arith.constant 0 : index
    %3 = vector.load %arg4[%c0_4, %c0_5] : memref<1x128xf32, #tpu.memory_space<vmem>>, vector<1x128xf32>
    %c8_i32 = arith.constant 8 : i32
    %4 = arith.muli %arg1, %c8_i32 : i32
    %5 = tpu.assume_multiple %4, 8 : i32
    %c0_6 = arith.constant 0 : index
    %6 = arith.index_cast %5 : i32 to index
    %c0_7 = arith.constant 0 : index
    %7 = vector.load %arg2[%c0_6, %6, %c0_7] : memref<1x16x128xf32, #tpu.memory_space<vmem>>, vector<1x8x128xf32>
    %8 = vector.shape_cast %7 : vector<1x8x128xf32> to vector<8x128xf32>
    %cst = arith.constant dense<0.000000e+00> : vector<16xf32>
    %9 = vector.multi_reduction <add>, %1, %cst [1] : vector<16x128xf32> to vector<16xf32>
    %10 = vector.shape_cast %9 : vector<16xf32> to vector<16x1xf32>
    %cst_8 = arith.constant 1.280000e+02 : f32
    %11 = vector.broadcast %cst_8 : f32 to vector<16x1xf32>
    %12 = arith.divf %10, %11 : vector<16x1xf32>
    %13 = vector.broadcast %12 : vector<16x1xf32> to vector<16x128xf32>
    %14 = arith.subf %1, %13 : vector<16x128xf32>
    %15 = arith.mulf %14, %14 : vector<16x128xf32>
    %cst_9 = arith.constant dense<0.000000e+00> : vector<16xf32>
    %16 = vector.multi_reduction <add>, %15, %cst_9 [1] : vector<16x128xf32> to vector<16xf32>
    %17 = vector.shape_cast %16 : vector<16xf32> to vector<16x1xf32>
    %cst_10 = arith.constant 1.280000e+02 : f32
    %18 = vector.broadcast %cst_10 : f32 to vector<16x1xf32>
    %19 = arith.divf %17, %18 : vector<16x1xf32>
    %cst_11 = arith.constant 9.99999974E-6 : f32
    %20 = vector.broadcast %cst_11 : f32 to vector<16x1xf32>
    %21 = arith.addf %19, %20 : vector<16x1xf32>
    %22 = math.rsqrt %21 : vector<16x1xf32>
    %23 = vector.broadcast %22 : vector<16x1xf32> to vector<16x128xf32>
    %24 = arith.mulf %14, %23 : vector<16x128xf32>
    %25 = vector.broadcast %2 : vector<1x128xf32> to vector<16x128xf32>
    %26 = arith.mulf %24, %25 : vector<16x128xf32>
    %27 = vector.broadcast %3 : vector<1x128xf32> to vector<16x128xf32>
    %28 = arith.addf %26, %27 : vector<16x128xf32>
    %cst_12 = arith.constant dense<0.000000e+00> : vector<8xf32>
    %29 = vector.multi_reduction <add>, %8, %cst_12 [1] : vector<8x128xf32> to vector<8xf32>
    %30 = vector.shape_cast %29 : vector<8xf32> to vector<8x1xf32>
    %cst_13 = arith.constant 1.280000e+02 : f32
    %31 = vector.broadcast %cst_13 : f32 to vector<8x1xf32>
    %32 = arith.divf %30, %31 : vector<8x1xf32>
    %33 = vector.broadcast %32 : vector<8x1xf32> to vector<8x128xf32>
    %34 = arith.subf %8, %33 : vector<8x128xf32>
    %35 = arith.mulf %34, %34 : vector<8x128xf32>
    %cst_14 = arith.constant dense<0.000000e+00> : vector<8xf32>
    %36 = vector.multi_reduction <add>, %35, %cst_14 [1] : vector<8x128xf32> to vector<8xf32>
    %37 = vector.shape_cast %36 : vector<8xf32> to vector<8x1xf32>
    %cst_15 = arith.constant 1.280000e+02 : f32
    %38 = vector.broadcast %cst_15 : f32 to vector<8x1xf32>
    %39 = arith.divf %37, %38 : vector<8x1xf32>
    %cst_16 = arith.constant 9.99999974E-6 : f32
    %40 = vector.broadcast %cst_16 : f32 to vector<8x1xf32>
    %41 = arith.addf %39, %40 : vector<8x1xf32>
    %42 = math.rsqrt %41 : vector<8x1xf32>
    %43 = vector.broadcast %42 : vector<8x1xf32> to vector<8x128xf32>
    %44 = arith.mulf %34, %43 : vector<8x128xf32>
    %45 = vector.broadcast %2 : vector<1x128xf32> to vector<8x128xf32>
    %46 = arith.mulf %44, %45 : vector<8x128xf32>
    %47 = vector.broadcast %3 : vector<1x128xf32> to vector<8x128xf32>
    %48 = arith.addf %46, %47 : vector<8x128xf32>
    %c0_17 = arith.constant 0 : index
    %c0_18 = arith.constant 0 : index
    %49 = vector.load %arg5[%c0_17, %c0_18] : memref<128x384xf32, #tpu.memory_space<vmem>>, vector<128x128xf32>
    %cst_19 = arith.constant dense<0.000000e+00> : vector<8x128xf32>
    %50 = tpu.matmul %48, %49, %cst_19 {dimension_numbers = #tpu.dot_dimension_numbers<[1], [0], [0], [1], [0, 0, 1, 1], [], []>} : vector<8x128xf32>, vector<128x128xf32>, vector<8x128xf32> -> vector<8x128xf32>
    %c0_20 = arith.constant 0 : index
    %c128 = arith.constant 128 : index
    %51 = vector.load %arg5[%c0_20, %c128] : memref<128x384xf32, #tpu.memory_space<vmem>>, vector<128x256xf32>
    %cst_21 = arith.constant dense<0.000000e+00> : vector<16x256xf32>
    %52 = tpu.matmul %28, %51, %cst_21 {dimension_numbers = #tpu.dot_dimension_numbers<[1], [0], [0], [1], [0, 0, 1, 1], [], []>} : vector<16x128xf32>, vector<128x256xf32>, vector<16x256xf32> -> vector<16x256xf32>
    %53 = vector.extract_strided_slice %52 {offsets = [0, 0], sizes = [16, 128], strides = [1, 1]} : vector<16x256xf32> to vector<16x128xf32>
    %54 = vector.extract_strided_slice %52 {offsets = [0, 128], sizes = [16, 128], strides = [1, 1]} : vector<16x256xf32> to vector<16x128xf32>
    %cst_22 = arith.constant 0.176776692 : f32
    %55 = vector.broadcast %cst_22 : f32 to vector<8x128xf32>
    %56 = arith.mulf %50, %55 : vector<8x128xf32>
    %57 = vector.shape_cast %56 : vector<8x128xf32> to vector<8x4x32xf32>
    %58 = vector.shape_cast %53 : vector<16x128xf32> to vector<16x4x32xf32>
    %59 = vector.shape_cast %54 : vector<16x128xf32> to vector<16x4x32xf32>
    "tpu.trace_start"() <{level = 10 : i32, message = "qhd,khd->hqk"}> : () -> ()
    %cst_23 = arith.constant dense<0.000000e+00> : vector<4x8x16xf32>
    %60 = tpu.matmul %57, %58, %cst_23 {dimension_numbers = #tpu.dot_dimension_numbers<[2], [2], [0], [0], [0, 1, 0, 0, 1, 0], [1], [1]>} : vector<8x4x32xf32>, vector<16x4x32xf32>, vector<4x8x16xf32> -> vector<4x8x16xf32>
    "tpu.trace_stop"() : () -> ()
    %cst_24 = arith.constant dense<0xFF800000> : vector<4x8xf32>
    %61 = vector.multi_reduction <maximumf>, %60, %cst_24 [2] : vector<4x8x16xf32> to vector<4x8xf32>
    %62 = vector.shape_cast %61 : vector<4x8xf32> to vector<4x8x1xf32>
    %63 = vector.broadcast %62 : vector<4x8x1xf32> to vector<4x8x16xf32>
    %64 = arith.subf %60, %63 : vector<4x8x16xf32>
    %65 = math.exp %64 : vector<4x8x16xf32>
    %cst_25 = arith.constant dense<0.000000e+00> : vector<4x8xf32>
    %66 = vector.multi_reduction <add>, %65, %cst_25 [2] : vector<4x8x16xf32> to vector<4x8xf32>
    %67 = vector.shape_cast %66 : vector<4x8xf32> to vector<4x8x1xf32>
    "tpu.trace_start"() <{level = 10 : i32, message = "hqk,khd->hqd"}> : () -> ()
    %cst_26 = arith.constant dense<0.000000e+00> : vector<4x8x32xf32>
    %68 = tpu.matmul %65, %59, %cst_26 {dimension_numbers = #tpu.dot_dimension_numbers<[2], [0], [1], [2], [0, 0, 0, 1, 1, 2], [0], [1]>} : vector<4x8x16xf32>, vector<16x4x32xf32>, vector<4x8x32xf32> -> vector<4x8x32xf32>
    "tpu.trace_stop"() : () -> ()
    %69 = tpu.reciprocal %67 {approx = true} : vector<4x8x1xf32> -> vector<4x8x1xf32>
    %70 = vector.broadcast %69 : vector<4x8x1xf32> to vector<4x8x32xf32>
    %71 = arith.mulf %68, %70 : vector<4x8x32xf32>
    %72 = tpu.transpose %71, [1, 0, 2] : vector<4x8x32xf32> -> vector<8x4x32xf32>
    %73 = vector.shape_cast %72 : vector<8x4x32xf32> to vector<8x128xf32>
    %c0_27 = arith.constant 0 : index
    %c0_28 = arith.constant 0 : index
    %74 = vector.load %arg6[%c0_27, %c0_28] : memref<128x128xf32, #tpu.memory_space<vmem>>, vector<128x128xf32>
    %cst_29 = arith.constant dense<0.000000e+00> : vector<8x128xf32>
    %75 = tpu.matmul %73, %74, %cst_29 {dimension_numbers = #tpu.dot_dimension_numbers<[1], [0], [0], [1], [0, 0, 1, 1], [], []>} : vector<8x128xf32>, vector<128x128xf32>, vector<8x128xf32> -> vector<8x128xf32>
    %c0_30 = arith.constant 0 : index
    %c0_31 = arith.constant 0 : index
    %76 = vector.load %arg7[%c0_30, %c0_31] : memref<1x128xf32, #tpu.memory_space<vmem>>, vector<1x128xf32>
    %77 = vector.broadcast %76 : vector<1x128xf32> to vector<8x128xf32>
    %78 = arith.addf %75, %77 : vector<8x128xf32>
    %79 = arith.addf %8, %78 : vector<8x128xf32>
    %c0_32 = arith.constant 0 : index
    %c0_33 = arith.constant 0 : index
    %80 = vector.load %arg8[%c0_32, %c0_33] : memref<1x128xf32, #tpu.memory_space<vmem>>, vector<1x128xf32>
    %c0_34 = arith.constant 0 : index
    %c0_35 = arith.constant 0 : index
    %81 = vector.load %arg9[%c0_34, %c0_35] : memref<1x128xf32, #tpu.memory_space<vmem>>, vector<1x128xf32>
    %cst_36 = arith.constant dense<0.000000e+00> : vector<8xf32>
    %82 = vector.multi_reduction <add>, %79, %cst_36 [1] : vector<8x128xf32> to vector<8xf32>
    %83 = vector.shape_cast %82 : vector<8xf32> to vector<8x1xf32>
    %cst_37 = arith.constant 1.280000e+02 : f32
    %84 = vector.broadcast %cst_37 : f32 to vector<8x1xf32>
    %85 = arith.divf %83, %84 : vector<8x1xf32>
    %86 = vector.broadcast %85 : vector<8x1xf32> to vector<8x128xf32>
    %87 = arith.subf %79, %86 : vector<8x128xf32>
    %88 = arith.mulf %87, %87 : vector<8x128xf32>
    %cst_38 = arith.constant dense<0.000000e+00> : vector<8xf32>
    %89 = vector.multi_reduction <add>, %88, %cst_38 [1] : vector<8x128xf32> to vector<8xf32>
    %90 = vector.shape_cast %89 : vector<8xf32> to vector<8x1xf32>
    %cst_39 = arith.constant 1.280000e+02 : f32
    %91 = vector.broadcast %cst_39 : f32 to vector<8x1xf32>
    %92 = arith.divf %90, %91 : vector<8x1xf32>
    %cst_40 = arith.constant 9.99999974E-6 : f32
    %93 = vector.broadcast %cst_40 : f32 to vector<8x1xf32>
    %94 = arith.addf %92, %93 : vector<8x1xf32>
    %95 = math.rsqrt %94 : vector<8x1xf32>
    %96 = vector.broadcast %95 : vector<8x1xf32> to vector<8x128xf32>
    %97 = arith.mulf %87, %96 : vector<8x128xf32>
    %98 = vector.broadcast %80 : vector<1x128xf32> to vector<8x128xf32>
    %99 = arith.mulf %97, %98 : vector<8x128xf32>
    %100 = vector.broadcast %81 : vector<1x128xf32> to vector<8x128xf32>
    %101 = arith.addf %99, %100 : vector<8x128xf32>
    %c0_41 = arith.constant 0 : index
    %c0_42 = arith.constant 0 : index
    %102 = vector.load %arg10[%c0_41, %c0_42] : memref<128x256xf32, #tpu.memory_space<vmem>>, vector<128x256xf32>
    %cst_43 = arith.constant dense<0.000000e+00> : vector<8x256xf32>
    %103 = tpu.matmul %101, %102, %cst_43 {dimension_numbers = #tpu.dot_dimension_numbers<[1], [0], [0], [1], [0, 0, 1, 1], [], []>} : vector<8x128xf32>, vector<128x256xf32>, vector<8x256xf32> -> vector<8x256xf32>
    %c0_44 = arith.constant 0 : index
    %c0_45 = arith.constant 0 : index
    %104 = vector.load %arg11[%c0_44, %c0_45] : memref<1x256xf32, #tpu.memory_space<vmem>>, vector<1x256xf32>
    %105 = vector.broadcast %104 : vector<1x256xf32> to vector<8x256xf32>
    %106 = arith.addf %103, %105 : vector<8x256xf32>
    %cst_46 = arith.constant 5.000000e-01 : f32
    %107 = vector.broadcast %cst_46 : f32 to vector<8x256xf32>
    %108 = arith.mulf %107, %106 : vector<8x256xf32>
    %cst_47 = arith.constant 0.707106769 : f32
    %109 = vector.broadcast %cst_47 : f32 to vector<8x256xf32>
    %110 = arith.mulf %106, %109 : vector<8x256xf32>
    %111 = math.erf %110 : vector<8x256xf32>
    %cst_48 = arith.constant 1.000000e+00 : f32
    %112 = vector.broadcast %cst_48 : f32 to vector<8x256xf32>
    %113 = arith.addf %112, %111 : vector<8x256xf32>
    %114 = arith.mulf %108, %113 : vector<8x256xf32>
    %c0_49 = arith.constant 0 : index
    %c0_50 = arith.constant 0 : index
    %115 = vector.load %arg12[%c0_49, %c0_50] : memref<256x128xf32, #tpu.memory_space<vmem>>, vector<256x128xf32>
    %cst_51 = arith.constant dense<0.000000e+00> : vector<8x128xf32>
    %116 = tpu.matmul %114, %115, %cst_51 {dimension_numbers = #tpu.dot_dimension_numbers<[1], [0], [0], [1], [0, 0, 1, 1], [], []>} : vector<8x256xf32>, vector<256x128xf32>, vector<8x128xf32> -> vector<8x128xf32>
    %c0_52 = arith.constant 0 : index
    %c0_53 = arith.constant 0 : index
    %117 = vector.load %arg13[%c0_52, %c0_53] : memref<1x128xf32, #tpu.memory_space<vmem>>, vector<1x128xf32>
    %118 = vector.broadcast %117 : vector<1x128xf32> to vector<8x128xf32>
    %119 = arith.addf %116, %118 : vector<8x128xf32>
    %120 = arith.addf %79, %119 : vector<8x128xf32>
    %c0_54 = arith.constant 0 : index
    %c0_55 = arith.constant 0 : index
    %c0_56 = arith.constant 0 : index
    %121 = vector.load %arg14[%c0_54, %c0_55, %c0_56] : memref<1x8x128xf32, #tpu.memory_space<vmem>>, vector<1x8x128xf32>
    %122 = vector.shape_cast %121 : vector<1x8x128xf32> to vector<8x128xf32>
    %123 = vector.shape_cast %120 : vector<8x128xf32> to vector<1x8x128xf32>
    tpu.vector_store %arg14[%c0_54, %c0_55, %c0_56], %123 {strides = array<i32>} : memref<1x8x128xf32, #tpu.memory_space<vmem>>, vector<1x8x128xf32>,
    return
  }
  func.func @transform_0(%arg0: i32, %arg1: i32) -> (i32, i32, i32) {
    %c0_i32 = arith.constant 0 : i32
    %c0_i32_0 = arith.constant 0 : i32
    %c0_i32_1 = arith.constant 0 : i32
    return %arg0, %c0_i32, %c0_i32_0 : i32, i32, i32
  }
  func.func @transform_1(%arg0: i32, %arg1: i32) -> (i32, i32) {
    %c0_i32 = arith.constant 0 : i32
    %c0_i32_0 = arith.constant 0 : i32
    %c0_i32_1 = arith.constant 0 : i32
    return %c0_i32, %c0_i32_0 : i32, i32
  }
  func.func @transform_2(%arg0: i32, %arg1: i32) -> (i32, i32) {
    %c0_i32 = arith.constant 0 : i32
    %c0_i32_0 = arith.constant 0 : i32
    %c0_i32_1 = arith.constant 0 : i32
    return %c0_i32, %c0_i32_0 : i32, i32
  }
  func.func @transform_3(%arg0: i32, %arg1: i32) -> (i32, i32) {
    %c0_i32 = arith.constant 0 : i32
    %c0_i32_0 = arith.constant 0 : i32
    %c0_i32_1 = arith.constant 0 : i32
    return %c0_i32, %c0_i32_0 : i32, i32
  }
  func.func @transform_4(%arg0: i32, %arg1: i32) -> (i32, i32) {
    %c0_i32 = arith.constant 0 : i32
    %c0_i32_0 = arith.constant 0 : i32
    %c0_i32_1 = arith.constant 0 : i32
    return %c0_i32, %c0_i32_0 : i32, i32
  }
  func.func @transform_5(%arg0: i32, %arg1: i32) -> (i32, i32) {
    %c0_i32 = arith.constant 0 : i32
    %c0_i32_0 = arith.constant 0 : i32
    %c0_i32_1 = arith.constant 0 : i32
    return %c0_i32, %c0_i32_0 : i32, i32
  }
  func.func @transform_6(%arg0: i32, %arg1: i32) -> (i32, i32) {
    %c0_i32 = arith.constant 0 : i32
    %c0_i32_0 = arith.constant 0 : i32
    %c0_i32_1 = arith.constant 0 : i32
    return %c0_i32, %c0_i32_0 : i32, i32
  }
  func.func @transform_7(%arg0: i32, %arg1: i32) -> (i32, i32) {
    %c0_i32 = arith.constant 0 : i32
    %c0_i32_0 = arith.constant 0 : i32
    %c0_i32_1 = arith.constant 0 : i32
    return %c0_i32, %c0_i32_0 : i32, i32
  }
  func.func @transform_8(%arg0: i32, %arg1: i32) -> (i32, i32) {
    %c0_i32 = arith.constant 0 : i32
    %c0_i32_0 = arith.constant 0 : i32
    %c0_i32_1 = arith.constant 0 : i32
    return %c0_i32, %c0_i32_0 : i32, i32
  }
  func.func @transform_9(%arg0: i32, %arg1: i32) -> (i32, i32) {
    %c0_i32 = arith.constant 0 : i32
    %c0_i32_0 = arith.constant 0 : i32
    %c0_i32_1 = arith.constant 0 : i32
    return %c0_i32, %c0_i32_0 : i32, i32
  }
  func.func @transform_10(%arg0: i32, %arg1: i32) -> (i32, i32) {
    %c0_i32 = arith.constant 0 : i32
    %c0_i32_0 = arith.constant 0 : i32
    %c0_i32_1 = arith.constant 0 : i32
    return %c0_i32, %c0_i32_0 : i32, i32
  }
  func.func @transform_11(%arg0: i32, %arg1: i32) -> (i32, i32) {
    %c0_i32 = arith.constant 0 : i32
    %c0_i32_0 = arith.constant 0 : i32
    %c0_i32_1 = arith.constant 0 : i32
    return %c0_i32, %c0_i32_0 : i32, i32
  }
  func.func @transform_12(%arg0: i32, %arg1: i32) -> (i32, i32, i32) {
    %c0_i32 = arith.constant 0 : i32
    %c0_i32_0 = arith.constant 0 : i32
    return %arg0, %arg1, %c0_i32 : i32, i32, i32
  }
}

</mosaic_0001>

<bundles_post_ra>
// kernel: tpu_custom_call.1
= control target key start
LH: loop header
LB: loop body
LE: loop exit
PB: predicated region body
PF: predicated region fallthrough
CT: control target
= control target key end

     0   :  { %s3538_s0 = inlined_call_operand.hbm [shape: f32[2,16,128], index: 0, kind: input, shape index: {}]   ;;  %s3539_s1 = inlined_call_operand.vmem [shape: f32[1,128], index: 1, kind: input, shape index: {}]   ;;  %s3540_s2 = inlined_call_operand.hbm [shape: f32[1,128], index: 2, kind: input, shape index: {}]   ;;  %s3541_s3 = inlined_call_operand.hbm [shape: f32[128,384], index: 3, kind: input, shape index: {}]   ;;  %s3542_s4 = inlined_call_operand.hbm [shape: f32[128,128], index: 4, kind: input, shape index: {}]   ;;  %s3543_s5 = inlined_call_operand.vmem [shape: f32[1,128], index: 5, kind: input, shape index: {}]   ;;  %s3544_s6 = inlined_call_operand.vmem [shape: f32[1,128], index: 6, kind: input, shape index: {}]   ;;  %s3545_s7 = inlined_call_operand.vmem [shape: f32[1,128], index: 7, kind: input, shape index: {}]   ;;  %s3546_s8 = inlined_call_operand.hbm [shape: f32[128,256], index: 8, kind: input, shape index: {}]   ;;  %s3547_s9 = inlined_call_operand.vmem [shape: f32[1,256], index: 9, kind: input, shape index: {}]   ;;  %s3548_s10 = inlined_call_operand.hbm [shape: f32[256,128], index: 10, kind: input, shape index: {}]   ;;  %s3549_s11 = inlined_call_operand.vmem [shape: f32[1,128], index: 11, kind: input, shape index: {}]   ;;  %s3550_s12 = inlined_call_operand.hbm [shape: f32[2,16,128], index: 12, kind: output, shape index: {}]  }
   0x1   :  { %3558 = sst [smem:[#allocation23_spill]] %s3539_s1 }
   0x2   :  { %3559 = sst [smem:[#allocation24_spill]] %s3540_s2 }
   0x3   :  { %3560 = sst [smem:[#allocation25_spill]] %s3541_s3 }
   0x4   :  { %3561 = sst [smem:[#allocation26_spill]] %s3542_s4 }
   0x5   :  { %3562 = sst [smem:[#allocation27_spill]] %s3543_s5 }
   0x6   :  { %3563 = sst [smem:[#allocation28_spill]] %s3544_s6 }
   0x7   :  { %3564 = sst [smem:[#allocation29_spill]] %s3545_s7 }
   0x8   :  { %3565 = sst [smem:[#allocation30_spill]] %s3546_s8 }
   0x9   :  { %3566 = sst [smem:[#allocation31_spill]] %s3547_s9 }
   0xa   :  { %3567 = sst [smem:[#allocation32_spill]] %s3548_s10 }
   0xb   :  { %3568 = sst [smem:[#allocation33_spill]] %s3549_s11 }
   0xc   :  { %3569 = sst [smem:[#allocation34_spill]] %s3550_s12 }
   0xd   :  { %17 = vsyncpa [#allocation3], 0 }
   0xe   :  { %19 = vsyncpa [#allocation3 + $0x1], 0 }
   0xf   :  { %20 = vsyncpa [#allocation6], 0 }
  0x10   :  { %21 = vsyncpa [#allocation9], 0 }
  0x11   :  { %22 = vsyncpa [#allocation12], 0 }
  0x12   :  { %23 = vsyncpa [#allocation4], 0 }
  0x13   :  { %25 = vsyncpa [#allocation4 + $0x1], 0  ;;  %s3089_s21 = smov 0   ;;  %s3091_s22 = smov 0  }
  0x14   :  { %s3093_s23 = smov 0   ;;  %s3095_s24 = smov 0  }
  0x15   :  { %s3097_s25 = smov 0   ;;  %s3099_s26 = smov 0  }
  0x16   :  { %s3101_s27 = smov 0   ;;  %s3103_s28 = smov 0  }
  0x17   :  { %s3105_s29 = smov 0   ;;  %s3107_s30 = smov 0  }
  0x18   :  { %s3109_s13 = smov 0  }
  0x19 LB: > { %3570 = sst [smem:[#allocation19_spill]] %s2990_s28  ;;  %s2232_s14 = sadd.s32 4294967295, %s3002_s13   ;;  %s3002_s13 = sphi %s3109_s13, %s31_s13   ;;  %s2998_s30 = sphi %s3107_s30, %s3601_s30   ;;  %s2994_s29 = sphi %s3105_s29, %s3609_s29   ;;  %s2990_s28 = sphi %s3103_s28, %s3599_s28   ;;  %s2986_s27 = sphi %s3101_s27, %s3608_s27   ;;  %s2982_s26 = sphi %s3099_s26, %s3607_s26   ;;  %s2978_s25 = sphi %s3097_s25, %s3606_s25   ;;  %s2974_s24 = sphi %s3095_s24, %s3605_s24   ;;  %s2970_s23 = sphi %s3093_s23, %s3604_s23   ;;  %s2966_s22 = sphi %s3091_s22, %s3603_s22   ;;  %s2962_s21 = sphi %s3089_s21, %s3602_s21  }
  0x1a   : > { %3571 = sst [smem:[#allocation20_spill]] %s2998_s30  ;;  %p2234_p0 = scmp.ge.s32.totalorder %s3002_s13, 1 }
  0x1b   : > { %p3146_p1 = scmp.eq.s32.totalorder %s2232_s14, 0  ;;  %p3150_p2 = scmp.eq.s32.totalorder %s2232_s14, 3 }
  0x1c   : > { %p333_p3 = scmp.lt.s32.totalorder %s3002_s13, 5  ;;  %s3004_s18 = smov [#allocation5]  }
  0x1d   : > { %s349_s19 = sshll.u32 %s3004_s18, 4  ;;  %s3005_s20 = smov [#allocation8]   ;;  %s350_s19 = int_to_ptr.vmem [resolvable:$true] %s349_s19 }
  0x1e   : > { %p3155_p4 = pnand %p2234_p0, %p333_p3  ;;  %s372_s12 = sshll.u32 %s3005_s20, 4  ;;  %s3161_s12 = int_to_ptr.vmem [resolvable:$true] %s372_s12 }
  0x1f   : > { %s3006_s11 = smov [#allocation7]   ;;  %s2723_s18 = scalar_lea.vmem %s350_s19, 16 }
  0x20   : > { %p2542_p5 = pneg %p3155_p4  ;;  %s359_s28 = sshll.u32 %s3006_s11, 4  ;;  %s360_s28 = int_to_ptr.vmem [resolvable:$true] %s359_s28 }
  0x21   : > { %p2724_p8 = scmp.ne.s32.totalorder %s350_s19, %s2723_s18  ;;  %s2730_s20 = scalar_lea.vmem %s350_s19, 32 }
  0x22   : > { %p3165_p6 = pnand %p2542_p5, %p3146_p1  ;;  %p2731_p11 = scmp.lt.s32.totalorder %s350_s19, %s350_s19 }
  0x23   : > { %p2732_p12 = scmp.lt.s32.totalorder %s2730_s20, %s2723_s18 }
  0x24   : > { %p3171_p7 = pneg %p3165_p6 }
  0x25   : > { %p2733_p13 = por %p2732_p12, %p2731_p11 }
  0x26   : > { %p2726_p9 = pnand %p2724_p8, %p3171_p7 }
  0x28   : > { %p2727_p10 = pneg %p2726_p9 }
  0x2a   : > { %p2734_p0 = pnand %p2733_p13, %p2727_p10 }
  0x2c   : > { %2737 = shalt.err (!%p2734_p0)
}
  0x2d   : > { %s3577_s2 = sld [smem:[#allocation24_spill]]  ;;  %s2749_s6 = scalar_lea.vmem %s3161_s12, 2048 }
  0x2e   : > { %p2750_p3 = scmp.ne.s32.totalorder %s3161_s12, %s2749_s6  ;;  %p2757_p9 = scmp.lt.s32.totalorder %s3161_s12, %s3161_s12 }
  0x2f   : > { %p2758_p11 = scmp.lt.s32.totalorder %s2749_s6, %s2749_s6 }
  0x30   : > { %p2752_p5 = pnand %p2750_p3, %p3171_p7 }
  0x31   : > { %p2759_p10 = por %p2758_p11, %p2757_p9 }
  0x32   : > { %p2753_p8 = pneg %p2752_p5 }
  0x33   : > { %2545 = dma.hbm_to_vmem [thread:$0]  (!%p3165_p6), %s3577_s2, 16, %s350_s19, [#allocation6]  }
  0x34   : > { %p2760_p12 = pnand %p2759_p10, %p2753_p8 }
  0x36   : > { %2763 = shalt.err (!%p2760_p12)
}
  0x37   : > { %s3552_s18 = smov 128   ;;  %s3554_s7 = smov 8  }
  0x38   : > { %s3578_s4 = sld [smem:[#allocation26_spill]]  ;;  %s2775_s11 = scalar_lea.vmem %s360_s28, 6144 }
  0x39   : > { %p2776_p13 = scmp.ne.s32.totalorder %s360_s28, %s2775_s11  ;;  %p2783_p5 = scmp.lt.s32.totalorder %s360_s28, %s360_s28 }
  0x3a   : > { %p2784_p8 = scmp.lt.s32.totalorder %s2775_s11, %s2775_s11 }
  0x3b   : > { %p2778_p0 = pnand %p2776_p13, %p3171_p7 }
  0x3c   : > { %p2785_p9 = por %p2784_p8, %p2783_p5 }
  0x3d   : > { %p2779_p3 = pneg %p2778_p0 }
  0x3e   : > { %2551 = dma.hbm_to_vmem [thread:$0]  (!%p3165_p6), %s3578_s4, 2048, %s3161_s12, [#allocation9], %s3552_s18, %s3552_s18, %s3554_s7  }
  0x3f   : > { %p2786_p11 = pnand %p2785_p9, %p2779_p3 }
  0x41   : > { %2789 = shalt.err (!%p2786_p11)
}
  0x42   : > { %s3009_s6 = smov 384   ;;  %s3010_s2 = smov 24  }
  0x43   : > { %s3579_s3 = sld [smem:[#allocation25_spill]]  ;;  %s3011_s12 = smov [#allocation10]  }
  0x44   : > { %s394_s19 = sshll.u32 %s3011_s12, 4  ;;  %s395_s19 = int_to_ptr.vmem [resolvable:$true] %s394_s19 }
  0x45   : > { %s2801_s20 = scalar_lea.vmem %s395_s19, 4096  ;;  %p2809_p0 = scmp.lt.s32.totalorder %s395_s19, %s395_s19 }
  0x46   : > { %p2802_p10 = scmp.ne.s32.totalorder %s395_s19, %s2801_s20  ;;  %p2810_p3 = scmp.lt.s32.totalorder %s2801_s20, %s2801_s20 }
  0x48   : > { %p2804_p12 = pnand %p2802_p10, %p3171_p7  ;;  %p2811_p5 = por %p2810_p3, %p2809_p0 }
  0x49   : > { %2548 = dma.hbm_to_vmem [thread:$0]  (!%p3165_p6), %s3579_s3, 6144, %s360_s28, [#allocation6], %s3009_s6, %s3009_s6, %s3010_s2  }
  0x4a   : > { %p2805_p13 = pneg %p2804_p12 }
  0x4c   : > { %p2812_p8 = pnand %p2811_p5, %p2805_p13 }
  0x4e   : > { %2815 = shalt.err (!%p2812_p8)
}
  0x4f   : > { %s3012_s11 = smov 256   ;;  %s3013_s18 = smov 16  }
  0x50   : > { %s3580_s8 = sld [smem:[#allocation30_spill]]  ;;  %s3014_s5 = smov [#allocation11]  }
  0x51   : > { %s410_s28 = sshll.u32 %s3014_s5, 4  ;;  %s411_s28 = int_to_ptr.vmem [resolvable:$true] %s410_s28 }
  0x52   : > { %s2827_s6 = scalar_lea.vmem %s411_s28, 4096  ;;  %p2835_p12 = scmp.lt.s32.totalorder %s411_s28, %s411_s28 }
  0x53   : > { %p2828_p9 = scmp.ne.s32.totalorder %s411_s28, %s2827_s6  ;;  %p2836_p13 = scmp.lt.s32.totalorder %s2827_s6, %s2827_s6 }
  0x55   : > { %p2830_p11 = pnand %p2828_p9, %p3171_p7  ;;  %p2837_p0 = por %p2836_p13, %p2835_p12 }
  0x56   : > { %2554 = dma.hbm_to_vmem [thread:$0]  (!%p3165_p6), %s3580_s8, 4096, %s395_s19, [#allocation9], %s3012_s11, %s3012_s11, %s3013_s18  }
  0x57   : > { %p2831_p10 = pneg %p2830_p11 }
  0x59   : > { %p2838_p3 = pnand %p2837_p0, %p2831_p10 }
  0x5b   : > { %2841 = shalt.err (!%p2838_p3)
}
  0x5c   : > { %s3581_s12 = smov 128   ;;  %s3582_s10 = sld [smem:[#allocation32_spill]] }
  0x5d   : > { %s2233_s9 = sadd.s32 4294967294, %s3002_s13   ;;  %s40_s14 = sadd.s32 1, %s2994_s29 }
  0x5e   : > { %p41_p7 = scmp.ge.s32.totalorder %s40_s14, 2  ;;  %s43_s19 = sadd.s32 1, %s2998_s30 }
  0x5f   : > { %s50_s11 = sadd.s32 1, %s2982_s26  ;;  %p57_p5 = scmp.ne.s32.totalorder %s2982_s26, %s2978_s25 }
  0x60   : > { %s3611_s14 = smov (%p41_p7, %s40_s14), 0  ;;  %s3613_s19 = smov (!%p41_p7, %s43_s19), %s2998_s30 }
  0x61   : > { %3583 = sst [smem:[#allocation21_spill]] %s3611_s14  ;;  %p58_p8 = scmp.eq.s32.totalorder %s3002_s13, 0 }
  0x62   : > { %2557 = dma.hbm_to_vmem [thread:$0]  (!%p3165_p6), %s3582_s10, 4096, %s411_s28, [#allocation12], %s3581_s12, %s3581_s12, %s3554_s7  }
  0x63   : > { %p63_p6 = scmp.ne.s32.totalorder %s2978_s25, %s2974_s24  ;;  %p45_p9 = scmp.ge.s32.totalorder %s3613_s19, 2 }
  0x64   : > { %s305_s1 = ssub.s32 %s2994_s29, %s3611_s14  ;;  %p3235_p11 = por %p58_p8, %p57_p5 }
  0x65   : > { %p3241_p10 = por %p3146_p1, %p63_p6  ;;  %s3615_s19 = smov (%p45_p9, %s3613_s19), 0 }
  0x66   : > { %3586 = sst [smem:[#allocation22_spill]] %s3615_s19  ;;  %s309_s28 = sadd.s32 1, %s2970_s23 }
  0x67   : > { %p319_p12 = scmp.ne.s32.totalorder %s2970_s23, %s2966_s22  ;;  %s47_s24 = ssub.s32 %s2998_s30, %s3615_s19 }
  0x68   : > { %p325_p13 = scmp.ne.s32.totalorder %s2966_s22, %s2962_s21  ;;  %p48_p0 = scmp.eq.s32.totalorder %s47_s24, 0 }
  0x69   : > { %s306_s6 = sor.u32 %s305_s1, %s47_s24  ;;  %p3256_p7 = por %p3150_p2, %p319_p12 }
  0x6a   : > { %p307_p3 = scmp.eq.s32.totalorder %s306_s6, 0  ;;  %p326_p5 = scmp.eq.s32.totalorder %s2233_s9, 3 }
  0x6b   : > { %s3261_s18 = scalar_select %p48_p0, %s2982_s26, %s50_s11  }
  0x6c   : > { %s3264_s7 = scalar_select %p307_p3, %s2970_s23, %s309_s28  }
  0x6d   : > { %p2571_p8 = scmp.lt.s32.totalorder %s3002_s13, 4  ;;  %s427_s3 = sand.u32 1, %s2982_s26  }
  0x6e   : > { %s2274_s4 = sshll.u32 %s2998_s30, 8  ;;  %p3269_p6 = por %p326_p5, %p325_p13 }
  0x6f   : > { %s2241_s10 = sshll.u32 %s427_s3, 4  ;;  %s437_s16 = scalar_lea.hbm %s3538_s0, %s2274_s4 }
  0x70   : > { %p3278_p2 = pnand %p2571_p8, %p3235_p11  ;;  %s431_s11 = scalar_lea.vmem [#allocation2], %s2241_s10 }
  0x71   : > { %s438_s9 = sshll.u32 %s431_s11, 4  ;;  %s428_s28 = scalar_lea.sflag [#allocation3], %s427_s3  ;;  %s439_s9 = int_to_ptr.vmem [resolvable:$true] %s438_s9 }
  0x72   : > { %p2844_p9 = pneg %p3278_p2  ;;  %s2855_s19 = scalar_lea.vmem %s439_s9, 256 }
  0x73   : > { %p2856_p12 = scmp.ne.s32.totalorder %s439_s9, %s2855_s19  ;;  %s3015_s14 = smov [#allocation2]  }
  0x74   : > { %s2860_s30 = sshll.u32 %s3015_s14, 4  ;;  %s2861_s30 = int_to_ptr.vmem [resolvable:$false] %s2860_s30 }
  0x75   : > { %p2858_p13 = pnand %p2856_p12, %p2844_p9  ;;  %s2862_s4 = scalar_lea.vmem %s2861_s30, 512 }
  0x76   : > { %p2863_p3 = scmp.lt.s32.totalorder %s439_s9, %s2861_s30  ;;  %p2864_p11 = scmp.lt.s32.totalorder %s2862_s4, %s2855_s19 }
  0x77   : > { %p2859_p0 = pneg %p2858_p13 }
  0x78   : > { %p2865_p5 = por %p2864_p11, %p2863_p3 }
  0x7a   : > { %p2866_p8 = pnand %p2865_p5, %p2859_p0 }
  0x7c   : > { %2869 = shalt.err (!%p2866_p8)
}
  0x7d   : > { %s3590_s10 = smov 8   ;;  %450 = sbr.rel (%p3155_p4) target bundleno = 2539 (0x9eb), region = 68 }
  0x7e   : > { %2561 = dma.hbm_to_vmem [thread:$0]  (!%p3278_p2), %s437_s16, 256, %s439_s9, %s428_s28, %s3581_s12, %s3581_s12, %s3590_s10  }
  0x7f   : > { %s452_s3 = sand.u32 (!%p3155_p4), 1, %s2978_s25  }
  0x80   : > { %s2245_s14 = sshll.u32 (!%p3155_p4), %s452_s3, 4  ;;  %s453_s2 = scalar_lea.sflag (!%p3155_p4), [#allocation3], %s452_s3 }
  0x81   : > { %s456_s1 = scalar_lea.vmem (!%p3155_p4), [#allocation2], %s2245_s14 }
  0x82   : > { %2941 = dma.done.wait (%p3241_p10), %s453_s2, 256  }
  0x83   : > { %2943 = vsyncadd (%p3241_p10), %s453_s2, 4294967040 }
  0x84   : > { %2945 = dma.done.wait (%p3146_p1), [#allocation6], 6160  }
  0x85   : > { %2947 = vsyncadd (%p3146_p1), [#allocation6], 4294961136 }
  0x86   : > { %2949 = dma.done.wait (%p3146_p1), [#allocation9], 6144  }
  0x87   : > { %2951 = vsyncadd (%p3146_p1), [#allocation9], 4294961152 }
  0x88   : > { %2953 = dma.done.wait (%p3146_p1), [#allocation12], 4096  }
  0x89   : > { %2955 = vsyncadd (%p3146_p1), [#allocation12], 4294963200  ;;  %s2252_s30 = sshll.u32 %s2986_s27, 3  ;;  %v517_v0 = vld [vmem:[%s456_s1] sm:$0xff]  ;;  %v518_v2 = vld [vmem:[%s456_s1 + $0x8] sm:$0xff]  ;;  %v3016_v7 = vmov 0.0  }
  0x8a   : > { %s522_s17 = scalar_lea.vmem %s456_s1, %s2252_s30 [#allocation2]  ;;  %524 = vadd.xlane.f32.xlu0 %v517_v0  ;;  %v693_v3 = vld [vmem:[#allocation7 + $0x178] sm:$0xff]  ;;  %v692_v4 = vld [vmem:[#allocation7 + $0x170] sm:$0xff]  ;;  %v691_v5 = vld [vmem:[#allocation7 + $0x160] sm:$0xff]  ;;  %2376 = vmatprep.subr.mxu0 %v3016_v7  ;;  %vm3017_vm0 = vmmov 0   ;;  %s3591_s19 = sld [smem:[#allocation23_spill]]  ;;  %vm947_vm1 = vcmask 261120  }
  0x8b   : > { %v3309_v1 = vld [vmem:[%s522_s17] sm:$0xff]  ;;  %694 = vmatprep.subr.mxu1 %v693_v3  ;;  %v591_v8 = vld [vmem:[#allocation7 + $0x168] sm:$0xff]  ;;  %v590_v10 = vld [vmem:[#allocation7 + $0x150] sm:$0xff]  ;;  %758 = vmatprep.mubr.f32.mxu1 %v3016_v7  ;;  %s3018_s5 = smov 64   ;;  %s3019_s24 = smov 96   ;;  %vm1236_vm2 = vcmask 130048  }
  0x8c   : > { %563 = vadd.xlane.f32.xlu1 %v3309_v1  ;;  %v690_v6 = vld [vmem:[#allocation7 + $0x158] sm:$0xff]  ;;  %695 = vmatpush1.msra.mxu1 %v692_v4  ;;  %v689_v9 = vld [vmem:[#allocation7 + $0x148] sm:$0xff]  ;;  %v688_v11 = vld [vmem:[#allocation7 + $0x140] sm:$0xff]  ;;  %s3020_s16 = smov 32   ;;  %vm1722_vm3 = vcmask 523264   ;;  %vm1724_vm4 = vcmask 785408  }
  0x8d   : > { %2377 = vmatpush3.msra.mxu0 %v591_v8  ;;  %696 = vmatprep.subr.mxu1 %v691_v5  ;;  %v687_v12 = vld [vmem:[#allocation7 + $0x130] sm:$0xff]  ;;  %v686_v13 = vld [vmem:[#allocation7 + $0x128] sm:$0xff]  ;;  %v685_v26 = vld [vmem:[#allocation7 + $0x118] sm:$0xff]  ;;  %s3592_s9 = sld [smem:[#allocation27_spill]]  ;;  %s514_s12 = sand.u32 1, %s2966_s22  }
  0x8e   : > { %526 = vadd.xlane.f32.xlu0 %v518_v2  ;;  %2378 = vmatprep.subr.mxu0 %v3016_v7  ;;  %v589_v27 = vld [vmem:[#allocation7 + $0x138] sm:$0xff]  ;;  %v684_v28 = vld [vmem:[#allocation7 + $0x110] sm:$0xff]  ;;  %v683_v29 = vld [vmem:[#allocation7 + $0x100] sm:$0xff]  ;;  %s3593_s10 = sld [smem:[#allocation28_spill]]  ;;  %s2084_s1 = scalar_lea.sflag [#allocation4], %s514_s12 }
  0x8f   : > { %697 = vmatpush1.msra.mxu1 %v690_v6  ;;  %2379 = vmatpush3.msra.mxu0 %v590_v10  ;;  %v588_v30 = vld [vmem:[#allocation7 + $0x120] sm:$0xff]  ;;  %v682_v31 = vld [vmem:[#allocation7 + $0xf8] sm:$0xff]  ;;  %v681_v32 = vld [vmem:[#allocation7 + $0xe8] sm:$0xff]  ;;  %s3594_s2 = sld [smem:[#allocation29_spill]]  ;;  %s3023_s30 = smov [#allocation13]  }
  0x90   : > { %698 = vmatprep.subr.mxu1 %v689_v9  ;;  %2380 = vmatprep.subr.mxu0 %v3016_v7  ;;  %v587_v33 = vld [vmem:[#allocation7 + $0x108] sm:$0xff]  ;;  %v680_v34 = vld [vmem:[#allocation7 + $0xe0] sm:$0xff]  ;;  %v679_v35 = vld [vmem:[#allocation7 + $0xd0] sm:$0xff]  ;;  %s3595_s17 = sld [smem:[#allocation31_spill]] }
  0x91   : > { %699 = vmatpush1.msra.mxu1 %v688_v11  ;;  %2381 = vmatpush3.msra.mxu0 %v589_v27  ;;  %v586_v36 = vld [vmem:[#allocation7 + $0xf0] sm:$0xff]  ;;  %v678_v37 = vld [vmem:[#allocation7 + $0xc8] sm:$0xff]  ;;  %v677_v38 = vld [vmem:[#allocation7 + $0xb8] sm:$0xff]  ;;  %s3596_s15 = sld [smem:[#allocation19_spill]] }
  0x92   : > { %700 = vmatprep.subr.mxu1 %v687_v12  ;;  %2382 = vmatprep.subr.mxu0 %v3016_v7  ;;  %v585_v39 = vld [vmem:[#allocation7 + $0xd8] sm:$0xff]  ;;  %v676_v40 = vld [vmem:[#allocation7 + $0xb0] sm:$0xff]  ;;  %v675_v41 = vld [vmem:[#allocation7 + $0xa0] sm:$0xff]  ;;  %s3597_s11 = sld [smem:[#allocation33_spill]] }
  0x93   : > { %701 = vmatpush1.msra.mxu1 %v686_v13  ;;  %2383 = vmatpush3.msra.mxu0 %v588_v30  ;;  %v584_v42 = vld [vmem:[#allocation7 + $0xc0] sm:$0xff]  ;;  %v674_v43 = vld [vmem:[#allocation7 + $0x98] sm:$0xff]  ;;  %v673_v44 = vld [vmem:[#allocation7 + $0x88] sm:$0xff]  ;;  %s3598_s14 = sld [smem:[#allocation34_spill]] }
  0x94   : > { %702 = vmatprep.subr.mxu1 %v685_v26  ;;  %2384 = vmatprep.subr.mxu0 %v3016_v7  ;;  %v583_v45 = vld [vmem:[#allocation7 + $0xa8] sm:$0xff]  ;;  %v672_v46 = vld [vmem:[#allocation7 + $0x80] sm:$0xff]  ;;  %v671_v47 = vld [vmem:[#allocation7 + $0x70] sm:$0xff] }
  0x95   : > { %703 = vmatpush1.msra.mxu1 %v684_v28  ;;  %2385 = vmatpush3.msra.mxu0 %v587_v33  ;;  %v582_v48 = vld [vmem:[#allocation7 + $0x90] sm:$0xff]  ;;  %v670_v49 = vld [vmem:[#allocation7 + $0x68] sm:$0xff]  ;;  %v669_v50 = vld [vmem:[#allocation7 + $0x58] sm:$0xff] }
  0x96   : > { %704 = vmatprep.subr.mxu1 %v683_v29  ;;  %2386 = vmatprep.subr.mxu0 %v3016_v7  ;;  %v581_v51 = vld [vmem:[#allocation7 + $0x78] sm:$0xff]  ;;  %v668_v52 = vld [vmem:[#allocation7 + $0x50] sm:$0xff]  ;;  %v667_v53 = vld [vmem:[#allocation7 + $0x40] sm:$0xff] }
  0x97   : > { %705 = vmatpush1.msra.mxu1 %v682_v31  ;;  %2387 = vmatpush3.msra.mxu0 %v586_v36  ;;  %v580_v54 = vld [vmem:[#allocation7 + $0x60] sm:$0xff]  ;;  %v666_v55 = vld [vmem:[#allocation7 + $0x38] sm:$0xff]  ;;  %v665_v56 = vld [vmem:[#allocation7 + $0x28] sm:$0xff] }
  0x98   : > { %706 = vmatprep.subr.mxu1 %v681_v32  ;;  %2388 = vmatprep.subr.mxu0 %v3016_v7  ;;  %v579_v57 = vld [vmem:[#allocation7 + $0x48] sm:$0xff]  ;;  %v664_v58 = vld [vmem:[#allocation7 + $0x20] sm:$0xff]  ;;  %v663_v59 = vld [vmem:[#allocation7 + $0x10] sm:$0xff] }
  0x99   : > { %707 = vmatpush1.msra.mxu1 %v680_v34  ;;  %2389 = vmatpush3.msra.mxu0 %v585_v39  ;;  %v578_v60 = vld [vmem:[#allocation7 + $0x30] sm:$0xff]  ;;  %v662_v61 = vld [vmem:[#allocation7 + $0x8] sm:$0xff]  ;;  %v577_v62 = vld [vmem:[#allocation7 + $0x18] sm:$0xff] }
  0x9a   : > { %708 = vmatprep.subr.mxu1 %v679_v35  ;;  %2390 = vmatprep.subr.mxu0 %v3016_v7  ;;  %v576_v63 = vld [vmem:[#allocation7] sm:$0xff]  ;;  %v2253_v12 = vld [vmem:[%s3591_s19] ss:$0 sm:$0xff]  ;;  %s2251_s19 = sshll.u32 %s514_s12, 3 }
  0x9b   : > { %709 = vmatpush1.msra.mxu1 %v678_v37  ;;  %2391 = vmatpush3.msra.mxu0 %v584_v42  ;;  %s516_s28 = scalar_lea.vmem [#allocation13], %s2251_s19 }
  0x9c   : > { %710 = vmatprep.subr.mxu1 %v677_v38  ;;  %2392 = vmatprep.subr.mxu0 %v3016_v7  ;;  %s2099_s4 = sshll.u32 %s516_s28, 4  ;;  %s2100_s4 = int_to_ptr.vmem [resolvable:$true] %s2099_s4 }
  0x9d   : > { %711 = vmatpush1.msra.mxu1 %v676_v40  ;;  %2393 = vmatpush3.msra.mxu0 %v583_v45 }
  0x9e   : > { %712 = vmatprep.subr.mxu1 %v675_v41  ;;  %2394 = vmatprep.subr.mxu0 %v3016_v7 }
  0x9f   : > { %713 = vmatpush1.msra.mxu1 %v674_v43  ;;  %2395 = vmatpush3.msra.mxu0 %v582_v48 }
  0xa0   : > { %714 = vmatprep.subr.mxu1 %v673_v44  ;;  %2396 = vmatprep.subr.mxu0 %v3016_v7 }
  0xa1   : > { %715 = vmatpush1.msra.mxu1 %v672_v46  ;;  %2397 = vmatpush3.msra.mxu0 %v581_v51 }
  0xa2   : > { %716 = vmatprep.subr.mxu1 %v671_v47  ;;  %2398 = vmatprep.subr.mxu0 %v3016_v7 }
  0xa3   : > { %717 = vmatpush1.msra.mxu1 %v670_v49  ;;  %2399 = vmatpush3.msra.mxu0 %v580_v54 }
  0xa4   : > { %718 = vmatprep.subr.mxu1 %v669_v50  ;;  %2400 = vmatprep.subr.mxu0 %v3016_v7 }
  0xa5   : > { %719 = vmatpush1.msra.mxu1 %v668_v52  ;;  %2401 = vmatpush3.msra.mxu0 %v579_v57 }
  0xa6   : > { %720 = vmatprep.subr.mxu1 %v667_v53  ;;  %2402 = vmatprep.subr.mxu0 %v3016_v7 }
  0xa7   : > { %721 = vmatpush1.msra.mxu1 %v666_v55  ;;  %2403 = vmatpush3.msra.mxu0 %v578_v60 }
  0xa8   : > { %722 = vmatprep.subr.mxu1 %v665_v56  ;;  %2404 = vmatprep.subr.mxu0 %v3016_v7 }
  0xa9   : > { %723 = vmatpush1.msra.mxu1 %v664_v58  ;;  %2408 = vmatprep.mubr.msk.f32.mxu0 %vm3017_vm0, %v3016_v7 }
  0xaa   : > { %724 = vmatprep.subr.mxu1 %v663_v59  ;;  %2405 = vmatpush3.msra.mxu0 %v577_v62 }
  0xab   : > { %725 = vmatpush1.msra.mxu1 %v662_v61  ;;  %2406 = vmatprep.subr.mxu0 %v3016_v7 }
  0xac   : > { %2411 = vmatprep.subr.mxu1 %v3016_v7  ;;  %2407 = vmatpush3.msra.mxu0 %v576_v63 }
  0xad   : > { %2455 = vmatprep.subr.mxu0 %v3016_v7 }
 0x113   : > { %v525_v14 = vpop.xlane.xlu0 %524 }
 0x114   : > { %v529_v16 = vmul.f32 0.0078125, %v525_v14  ;;  %v2254_v14 = vld [vmem:[#allocation5] ss:$0 sm:$0xff] }
 0x115   : > { %v564_v15 = vpop.xlane.xlu1 %563 }
 0x116   : > { %v565_v17 = vmul.f32 0.0078125, %v564_v15  ;;  %v3316_v18 = vsub.f32 %v517_v0, %v529_v16 }
 0x117   : > { %v527_v20 = vpop.xlane.xlu0 %526 }
 0x118   : > { %v3319_v19 = vsub.f32 %v3309_v1, %v565_v17  ;;  %v530_v21 = vmul.f32 0.0078125, %v527_v20  ;;  %v533_v22 = vmul.f32 %v3316_v18, %v3316_v18 }
 0x11a   : > { %v3323_v23 = vsub.f32 %v518_v2, %v530_v21  ;;  %535 = vadd.xlane.f32.xlu1 %v533_v22  ;;  %v567_v24 = vmul.f32 %v3319_v19, %v3319_v19 }
 0x11c   : > { %v534_v25 = vmul.f32 %v3323_v23, %v3323_v23 }
 0x11e   : > { %568 = vadd.xlane.f32.xlu1 %v567_v24  ;;  %537 = vadd.xlane.f32.xlu0 %v534_v25 }
 0x1a3   : > { %v536_v0 = vpop.xlane.xlu1 %535 }
 0x1a4   : > { %v539_v2 = vmul.f32 0.0078125, %v536_v0 }
 0x1a6   : > { %v541_v3 = vadd.f32 1e-05, %v539_v2 }
 0x1a7   : > { %v569_v4 = vpop.xlane.xlu1 %568  ;;  %v538_v5 = vpop.xlane.xlu0 %537 }
 0x1a8   : > { %2684 = vrsqrt.f32 %v541_v3  ;;  %v570_v6 = vmul.f32 0.0078125, %v569_v4  ;;  %v540_v8 = vmul.f32 0.0078125, %v538_v5 }
 0x1aa   : > { %v571_v9 = vadd.f32 1e-05, %v570_v6  ;;  %v542_v10 = vadd.f32 1e-05, %v540_v8 }
 0x1ac   : > { %2686 = vrsqrt.f32 %v571_v9 }
 0x1ad   : > { %2688 = vrsqrt.f32 %v542_v10 }
 0x1b5   : > { %v2685_v11 = vpop.eup %2684 }
 0x1b6   : > { %v545_v13 = vmul.f32 %v2685_v11, %v3316_v18 }
 0x1b8   : > { %v553_v15 = vmul.f32 %v2253_v12, %v545_v13 }
 0x1b9   : > { %v2687_v16 = vpop.eup %2686 }
 0x1ba   : > { %v2689_v17 = vpop.eup %2688  ;;  %v561_v20 = vadd.f32 %v2254_v14, %v553_v15  ;;  %v573_v21 = vmul.f32 %v2687_v16, %v3319_v19 }
 0x1bb   : > { %v546_v22 = vmul.f32 %v2689_v17, %v3323_v23 }
 0x1bc   : > { %759 = vmatmul.mubr.f32.vlgmr.msra.gmra.mxu1 %v561_v20  ;;  %v574_v24 = vmul.f32 %v2253_v12, %v573_v21 }
 0x1bd   : > { %764 = vmatprep.mubr.f32.mxu1 %v3016_v7  ;;  %v554_v25 = vmul.f32 %v2253_v12, %v546_v22 }
 0x1be   : > { %v575_v26 = vadd.f32 %v2254_v14, %v574_v24 }
 0x1bf   : > { %v562_v27 = vadd.f32 %v2254_v14, %v554_v25 }
 0x1c0   : > { %2409 = vmatmul.mubr.f32.vlgmr.msra.gmra.mxu0 %v575_v26 }
 0x1c1   : > { %765 = vmatmul.mubr.f32.gmra.mxu1 %v562_v27  ;;  %2459 = vmatprep.mubr.msk.f32.mxu0 %vm3017_vm0, %v3016_v7 }
 0x1c2   : > { %2419 = vmatprep.mubr.msk.f32.mxu1 %vm3017_vm0, %v3016_v7 }
 0x27c   : > { %v760_v18 = vpop.f32.mrf.mxu1 }
 0x27d   : > { %787 = vrot.lane.b32.xlu1 %v760_v18, %s3018_s5  ;;  %781 = vrot.lane.b32.xlu0 %v760_v18, %s3019_s24 }
 0x27e   : > { %v3359_v19 = vpop.f32.mrf.mxu1 }
 0x280   : > { %v658_v23 = vpop.f32.mrf.mxu0 }
 0x281   : > { %v766_v28 = vpop.f32.mrf.mxu1  ;;  %793 = vrot.lane.b32.xlu0 %v760_v18, %s3020_s16  ;;  %v771_v30 = vmul.f32 0.17677669, %v658_v23 }
 0x282   : > { %783 = vrot.lane.b32.xlu1 %v766_v28, %s3019_s24  ;;  %v2410_v29 = vpop.f32.mrf.mxu0 }
 0x283   : > { %v768_v31 = vpop.f32.mrf.mxu1 }
 0x284   : > { %2456 = vmatpush3.msra.mxu0 %v768_v31 }
 0x285   : > { %2457 = vmatprep.subr.mxu0 %v3016_v7  ;;  %773 = vrot.lane.b32.xlu0 %v771_v30, %s3019_s24 }
 0x286   : > { %789 = vrot.lane.b32.xlu1 %v766_v28, %s3018_s5  ;;  %2458 = vmatpush3.msra.mxu0 %v3359_v19 }
 0x287   : > { %2469 = vmatprep.subr.mxu0 %v3016_v7 }
 0x289   : > { %775 = vrot.lane.b32.xlu0 %v771_v30, %s3018_s5 }
 0x28a   : > { %795 = vrot.lane.b32.xlu1 %v766_v28, %s3020_s16 }
 0x2b3   : > { %819 = vxpose.xlu1.b32.start [1/2] (short) (narrow) %v760_v18, 32 }
 0x2b7   : > { %820 = vxpose.xlu1.b32.end [2/2] (short) (narrow) %v766_v28, 32 }
 0x2ef   : > { %v788_v32 = vpop.permute.xlu1 %787  ;;  %v782_v33 = vpop.permute.xlu0 %781 }
 0x2f0   : > { %883 = vxpose.xlu1.b32.start [1/2] (short) (narrow) %v788_v32, 32  ;;  %851 = vxpose.xlu0.b32.start [1/2] (short) (narrow) %v782_v33, 32  ;;  %v1741_v33 = vld [vmem:[#allocation8 + $0x78] sm:$0xff] }
 0x2f3   : > { %v794_v36 = vpop.permute.xlu0 %793 }
 0x2f4   : > { %v784_v34 = vpop.permute.xlu1 %783 }
 0x2f5   : > { %852 = vxpose.xlu0.b32.end [2/2] (short) (narrow) %v784_v34, 32  ;;  %v1740_v34 = vld [vmem:[#allocation8 + $0x70] sm:$0xff] }
 0x2f7   : > { %v774_v42 = vpop.permute.xlu0 %773 }
 0x2f8   : > { %v790_v35 = vpop.permute.xlu1 %789 }
 0x2f9   : > { %884 = vxpose.xlu1.b32.end [2/2] (short) (narrow) %v790_v35, 32  ;;  %v1739_v35 = vld [vmem:[#allocation8 + $0x68] sm:$0xff] }
 0x2fb   : > { %v776_v43 = vpop.permute.xlu0 %775 }
 0x2fc   : > { %v796_v37 = vpop.permute.xlu1 %795 }
 0x302   : > { %915 = vxpose.xlu1.b32.start [1/2] (short) (narrow) %v794_v36, 32  ;;  %v1738_v36 = vld [vmem:[#allocation8 + $0x60] sm:$0xff] }
 0x306   : > { %916 = vxpose.xlu1.b32.end [2/2] (short) (narrow) %v796_v37, 32  ;;  %v1737_v37 = vld [vmem:[#allocation8 + $0x58] sm:$0xff] }
 0x326   : > { %777 = vrot.lane.b32.xlu0 %v771_v30, %s3020_s16 }
 0x32a   : > { %801 = vrot.lane.b32.xlu0 %v3359_v19, %s3019_s24 }
 0x32c   : > { %803 = vrot.lane.b32.xlu1 %v768_v31, %s3019_s24 }
 0x32f   : > { %v835_v38 = vpop.trf.xlu1 }
 0x330   : > { %809 = vrot.lane.b32.xlu1 %v768_v31, %s3018_s5 }
 0x333   : > { %v836_v39 = vpop.trf.xlu1 }
 0x334   : > { %815 = vrot.lane.b32.xlu1 %v768_v31, %s3020_s16 }
 0x337   : > { %v837_v40 = vpop.trf.xlu1 }
 0x33b   : > { %v838_v41 = vpop.trf.xlu1 }
 0x33c   : > { %2412 = vmatpush3.msra.mxu1 %v838_v41  ;;  %v1733_v41 = vld [vmem:[#allocation8 + $0x38] sm:$0xff] }
 0x33d   : > { %2413 = vmatprep.subr.mxu1 %v3016_v7 }
 0x33e   : > { %2414 = vmatpush3.msra.mxu1 %v837_v40  ;;  %v1734_v40 = vld [vmem:[#allocation8 + $0x40] sm:$0xff] }
 0x33f   : > { %2415 = vmatprep.subr.mxu1 %v3016_v7 }
 0x340   : > { %2416 = vmatpush3.msra.mxu1 %v836_v39  ;;  %v1735_v39 = vld [vmem:[#allocation8 + $0x48] sm:$0xff] }
 0x341   : > { %2417 = vmatprep.subr.mxu1 %v3016_v7 }
 0x342   : > { %2418 = vmatpush3.msra.mxu1 %v835_v38  ;;  %v1736_v38 = vld [vmem:[#allocation8 + $0x50] sm:$0xff] }
 0x343   : > { %2420 = vmatmul.mubr.msk.f32.vlgmr.msra.gmra.mxu1 %vm947_vm1, %v771_v30  ;;  %2422 = vmatprep.subr.mxu1 %v3016_v7 }
 0x344   : > { %2430 = vmatprep.mubr.msk.f32.mxu1 %vm3017_vm0, %v3016_v7 }
 0x36d   : > { %v867_v44 = vpop.trf.xlu0 }
 0x371   : > { %v899_v45 = vpop.trf.xlu1  ;;  %v868_v46 = vpop.trf.xlu0 }
 0x375   : > { %v900_v47 = vpop.trf.xlu1  ;;  %v869_v48 = vpop.trf.xlu0 }
 0x379   : > { %v901_v49 = vpop.trf.xlu1  ;;  %v870_v50 = vpop.trf.xlu0 }
 0x37a   : > { %2423 = vmatpush3.msra.mxu1 %v870_v50 }
 0x37b   : > { %2424 = vmatprep.subr.mxu1 %v3016_v7 }
 0x37c   : > { %2425 = vmatpush3.msra.mxu1 %v869_v48 }
 0x37d   : > { %v902_v51 = vpop.trf.xlu1  ;;  %2426 = vmatprep.subr.mxu1 %v3016_v7 }
 0x37e   : > { %2427 = vmatpush3.msra.mxu1 %v868_v46  ;;  %v1730_v46 = vld [vmem:[#allocation8 + $0x20] sm:$0xff] }
 0x37f   : > { %2428 = vmatprep.subr.mxu1 %v3016_v7 }
 0x380   : > { %2429 = vmatpush3.msra.mxu1 %v867_v44  ;;  %v1731_v44 = vld [vmem:[#allocation8 + $0x28] sm:$0xff] }
 0x381   : > { %v931_v52 = vpop.trf.xlu1  ;;  %2431 = vmatmul.mubr.msk.f32.vlgmr.msra.gmra.mxu1 %vm947_vm1, %v774_v42  ;;  %2433 = vmatprep.subr.mxu1 %v3016_v7  ;;  %v1732_v42 = vld [vmem:[#allocation8 + $0x30] sm:$0xff] }
 0x382   : > { %2434 = vmatpush3.msra.mxu1 %v902_v51  ;;  %2441 = vmatprep.mubr.msk.f32.mxu1 %vm3017_vm0, %v3016_v7 }
 0x383   : > { %2435 = vmatprep.subr.mxu1 %v3016_v7 }
 0x384   : > { %2436 = vmatpush3.msra.mxu1 %v901_v49 }
 0x385   : > { %v932_v53 = vpop.trf.xlu1  ;;  %2437 = vmatprep.subr.mxu1 %v3016_v7 }
 0x386   : > { %2438 = vmatpush3.msra.mxu1 %v900_v47  ;;  %v1729_v47 = vld [vmem:[#allocation8 + $0x18] sm:$0xff] }
 0x387   : > { %2439 = vmatprep.subr.mxu1 %v3016_v7 }
 0x388   : > { %2440 = vmatpush3.msra.mxu1 %v899_v45 }
 0x389   : > { %v933_v54 = vpop.trf.xlu1  ;;  %2442 = vmatmul.mubr.msk.f32.vlgmr.msra.gmra.mxu1 %vm947_vm1, %v776_v43  ;;  %2444 = vmatprep.subr.mxu1 %v3016_v7 }
 0x38a   : > { %2452 = vmatprep.mubr.msk.f32.mxu1 %vm3017_vm0, %v3016_v7 }
 0x38d   : > { %v934_v55 = vpop.trf.xlu1 }
 0x38e   : > { %2445 = vmatpush3.msra.mxu1 %v934_v55 }
 0x38f   : > { %2446 = vmatprep.subr.mxu1 %v3016_v7 }
 0x390   : > { %2447 = vmatpush3.msra.mxu1 %v933_v54 }
 0x391   : > { %2448 = vmatprep.subr.mxu1 %v3016_v7 }
 0x392   : > { %2449 = vmatpush3.msra.mxu1 %v932_v53 }
 0x393   : > { %2450 = vmatprep.subr.mxu1 %v3016_v7 }
 0x394   : > { %2451 = vmatpush3.msra.mxu1 %v931_v52 }
 0x395   : > { %2462 = vmatprep.subr.mxu1 %v3016_v7 }
 0x398   : > { %v778_v56 = vpop.permute.xlu0 %777 }
 0x399   : > { %2453 = vmatmul.mubr.msk.f32.vlgmr.msra.gmra.mxu1 %vm947_vm1, %v778_v56  ;;  %v3021_v56 = vmov 1983009808  }
 0x39a   : > { %2466 = vmatprep.mubr.msk.f32.mxu1 %vm3017_vm0, %v3016_v7 }
 0x39c   : > { %v802_v58 = vpop.permute.xlu0 %801 }
 0x39e   : > { %v804_v57 = vpop.permute.xlu1 %803 }
 0x39f   : > { %2463 = vmatpush3.msra.mxu1 %v804_v57  ;;  %v1576_v57 = vunpack.c.l.s4 %v3021_v56 }
 0x3a0   : > { %2464 = vmatprep.subr.mxu1 %v3016_v7 }
 0x3a1   : > { %2465 = vmatpush3.msra.mxu1 %v802_v58  ;;  %v1578_v58 = vlaneseq }
 0x3a2   : > { %2476 = vmatprep.subr.mxu1 %v3016_v7  ;;  %v810_v9 = vpop.permute.xlu1 %809 }
 0x3a6   : > { %v816_v10 = vpop.permute.xlu1 %815 }
 0x403   : > { %v1016_v59 = vpop.f32.mrf.mxu1 }
 0x404   : > { %v1237_v60 = vsel %vm1236_vm2, %v1016_v59, -inf }
 0x405   : > { %v2421_v61 = vpop.f32.mrf.mxu1  ;;  %1238 = vmax.xlane.f32.xlu1 %v1237_v60  ;;  %v1577_v60 = vunpack.c.0.s8 %v1576_v57 }
 0x406   : > { %v3445_v61 = vshrl.u32 %v1578_v58, 7  ;;  %v2265_v58 = vld [vmem:[%s3592_s9] ss:$0 sm:$0xff] }
 0x441   : > { %v1088_v62 = vpop.f32.mrf.mxu1 }
 0x442   : > { %v1240_v63 = vsel %vm1236_vm2, %v1088_v62, -inf }
 0x443   : > { %1241 = vmax.xlane.f32.xlu0 %v1240_v63  ;;  %v2432_v0 = vpop.f32.mrf.mxu1 }
 0x449   : > { %v1160_v2 = vpop.f32.mrf.mxu1 }
 0x44a   : > { %v1243_v3 = vsel %vm1236_vm2, %v1160_v2, -inf }
 0x44b   : > { %1244 = vmax.xlane.f32.xlu1 %v1243_v3  ;;  %v2443_v4 = vpop.f32.mrf.mxu1 }
 0x459   : > { %v1232_v5 = vpop.f32.mrf.mxu1 }
 0x45a   : > { %v1246_v6 = vsel %vm1236_vm2, %v1232_v5, -inf }
 0x45b   : > { %1247 = vmax.xlane.f32.xlu0 %v1246_v6  ;;  %v2454_v8 = vpop.f32.mrf.mxu1  ;;  %v1580_v6 = vsub.s32 %v1577_v60, %v3445_v61 }
 0x45c   : > { %813 = vrot.lane.b32.xlu1 %v3359_v19, %s3020_s16 }
 0x471   : > { %807 = vrot.lane.b32.xlu0 %v3359_v19, %s3018_s5 }
 0x48e   : > { %v1239_v11 = vpop.xlane.xlu1 %1238 }
 0x48f   : > { %v1249_v12 = vsub.f32 %v1016_v59, %v1239_v11 }
 0x491   : > { %v1253_v13 = vmul.f32 1.442695, %v1249_v12 }
 0x493   : > { %2690 = vpow2.f32 %v1253_v13 }
 0x4a0   : > { %v2691_v14 = vpop.eup %2690 }
 0x4a1   : > { %2460 = vmatmul.mubr.msk.f32.vlgmr.msra.gmra.mxu0 %vm1236_vm2, %v2691_v14  ;;  %v1261_v15 = vsel %vm1236_vm2, %v2691_v14, 0.0 }
 0x4a2   : > { %2470 = vmatpush3.msra.mxu0 %v810_v9  ;;  %1262 = vadd.xlane.f32.xlu0 %v1261_v15 }
 0x4a3   : > { %2471 = vmatprep.subr.mxu0 %v3016_v7  ;;  %2473 = vmatprep.mubr.msk.f32.mxu0 %vm3017_vm0, %v3016_v7 }
 0x4cc   : > { %v1242_v16 = vpop.xlane.xlu0 %1241 }
 0x4cd   : > { %v1250_v17 = vsub.f32 %v1088_v62, %v1242_v16  ;;  %v3022_v62 = vmov 1934713408  }
 0x4ce   : > { %v1608_v63 = vunpack.c.l.s4 %v3022_v62 }
 0x4cf   : > { %v1255_v20 = vmul.f32 1.442695, %v1250_v17 }
 0x4d0   : > { %v1609_v9 = vunpack.c.0.s8 %v1608_v63 }
 0x4d1   : > { %2692 = vpow2.f32 %v1255_v20 }
 0x4d2   : > { %v1612_v17 = vsub.s32 %v1609_v9, %v3445_v61  ;;  %v1871_v9 = vld [vmem:[#allocation10 + $0xc0] sm:$0xff] }
 0x4d4   : > { %v1245_v21 = vpop.xlane.xlu1 %1244 }
 0x4d5   : > { %v1251_v22 = vsub.f32 %v1160_v2, %v1245_v21 }
 0x4d7   : > { %v1257_v24 = vmul.f32 1.442695, %v1251_v22 }
 0x4d8   : > { %v814_v27 = vpop.permute.xlu1 %813 }
 0x4d9   : > { %2694 = vpow2.f32 %v1257_v24 }
 0x4de   : > { %v2693_v25 = vpop.eup %2692 }
 0x4df   : > { %2467 = vmatmul.mubr.msk.f32.vlgmr.msra.gmra.mxu1 %vm1236_vm2, %v2693_v25  ;;  %v1264_v26 = vsel %vm1236_vm2, %v2693_v25, 0.0 }
 0x4e0   : > { %2477 = vmatpush3.msra.mxu1 %v816_v10  ;;  %1265 = vadd.xlane.f32.xlu1 %v1264_v26 }
 0x4e1   : > { %2478 = vmatprep.subr.mxu1 %v3016_v7  ;;  %2480 = vmatprep.mubr.msk.f32.mxu1 %vm3017_vm0, %v3016_v7 }
 0x4e2   : > { %2479 = vmatpush3.msra.mxu1 %v814_v27 }
 0x4e4   : > { %v1248_v18 = vpop.xlane.xlu0 %1247 }
 0x4e5   : > { %v1252_v19 = vsub.f32 %v1232_v5, %v1248_v18 }
 0x4e6   : > { %v2695_v23 = vpop.eup %2694 }
 0x4e7   : > { %v1259_v28 = vmul.f32 1.442695, %v1252_v19  ;;  %v1267_v29 = vsel %vm1236_vm2, %v2695_v23, 0.0  ;;  %v1728_v19 = vld [vmem:[#allocation8 + $0x10] sm:$0xff] }
 0x4e8   : > { %1268 = vadd.xlane.f32.xlu0 %v1267_v29  ;;  %v808_v30 = vpop.permute.xlu0 %807 }
 0x4e9   : > { %2696 = vpow2.f32 %v1259_v28  ;;  %2472 = vmatpush3.msra.mxu0 %v808_v30 }
 0x4ea   : > { %2474 = vmatmul.mubr.msk.f32.vlgmr.msra.gmra.mxu0 %vm1236_vm2, %v2695_v23  ;;  %2483 = vmatprep.subr.mxu0 %v3016_v7  ;;  %v1727_v23 = vld [vmem:[#allocation8 + $0x8] sm:$0xff] }
 0x4eb   : > { %2515 = vmatprep.mubr.msk.f32.mxu0 %vm3017_vm0, %v3016_v7  ;;  %2484 = vmatpush3.msra.mxu0 %v1741_v33 }
 0x4ec   : > { %2485 = vmatprep.subr.mxu0 %v3016_v7 }
 0x4ed   : > { %2486 = vmatpush3.msra.mxu0 %v1740_v34 }
 0x4ee   : > { %2487 = vmatprep.subr.mxu0 %v3016_v7 }
 0x4ef   : > { %2488 = vmatpush3.msra.mxu0 %v1739_v35 }
 0x4f0   : > { %2489 = vmatprep.subr.mxu0 %v3016_v7 }
 0x4f1   : > { %2490 = vmatpush3.msra.mxu0 %v1738_v36  ;;  %v1726_v36 = vld [vmem:[#allocation8] sm:$0xff] }
 0x4f2   : > { %2491 = vmatprep.subr.mxu0 %v3016_v7 }
 0x4f3   : > { %2492 = vmatpush3.msra.mxu0 %v1737_v37 }
 0x4f4   : > { %2493 = vmatprep.subr.mxu0 %v3016_v7 }
 0x4f5   : > { %2494 = vmatpush3.msra.mxu0 %v1736_v38 }
 0x4f6   : > { %v2697_v31 = vpop.eup %2696  ;;  %2495 = vmatprep.subr.mxu0 %v3016_v7 }
 0x4f7   : > { %2481 = vmatmul.mubr.msk.f32.vlgmr.msra.gmra.mxu1 %vm1236_vm2, %v2697_v31  ;;  %v1270_v32 = vsel %vm1236_vm2, %v2697_v31, 0.0  ;;  %2496 = vmatpush3.msra.mxu0 %v1735_v39 }
 0x4f8   : > { %1271 = vadd.xlane.f32.xlu0 %v1270_v32  ;;  %1955 = vmatprep.mubr.f32.mxu1 %v3016_v7 }
 0x4f9   : > { %2497 = vmatprep.subr.mxu0 %v3016_v7 }
 0x4fa   : > { %2498 = vmatpush3.msra.mxu0 %v1734_v40 }
 0x4fb   : > { %2499 = vmatprep.subr.mxu0 %v3016_v7 }
 0x4fc   : > { %2500 = vmatpush3.msra.mxu0 %v1733_v41 }
 0x4fd   : > { %2501 = vmatprep.subr.mxu0 %v3016_v7 }
 0x4fe   : > { %2502 = vmatpush3.msra.mxu0 %v1732_v42 }
 0x4ff   : > { %2503 = vmatprep.subr.mxu0 %v3016_v7 }
 0x500   : > { %2504 = vmatpush3.msra.mxu0 %v1731_v44 }
 0x501   : > { %2505 = vmatprep.subr.mxu0 %v3016_v7 }
 0x502   : > { %2506 = vmatpush3.msra.mxu0 %v1730_v46 }
 0x503   : > { %2507 = vmatprep.subr.mxu0 %v3016_v7 }
 0x504   : > { %2508 = vmatpush3.msra.mxu0 %v1729_v47 }
 0x505   : > { %2509 = vmatprep.subr.mxu0 %v3016_v7 }
 0x506   : > { %2510 = vmatpush3.msra.mxu0 %v1728_v19  ;;  %v1857_v19 = vld [vmem:[#allocation10 + $0x50] sm:$0xff] }
 0x507   : > { %2511 = vmatprep.subr.mxu0 %v3016_v7 }
 0x508   : > { %2512 = vmatpush3.msra.mxu0 %v1727_v23  ;;  %v1856_v23 = vld [vmem:[#allocation10 + $0x48] sm:$0xff] }
 0x509   : > { %2513 = vmatprep.subr.mxu0 %v3016_v7 }
 0x50a   : > { %2514 = vmatpush3.msra.mxu0 %v1726_v36  ;;  %v1847_v36 = vld [vmem:[#allocation10] sm:$0xff] }
 0x52b   : > { %v1263_v48 = vpop.xlane.xlu0 %1262 }
 0x561   : > { %v1342_v43 = vpop.f32.mrf.mxu0 }
 0x563   : > { %v2461_v45 = vpop.f32.mrf.mxu0 }
 0x569   : > { %v1266_v52 = vpop.xlane.xlu1 %1265 }
 0x571   : > { %v1269_v51 = vpop.xlane.xlu0 %1268 }
 0x572   : > { %2698 = vrcp.f32 %v1269_v51 }
 0x573   : > { %2700 = vrcp.f32 %v1263_v48 }
 0x574   : > { %2702 = vrcp.f32 %v1266_v52 }
 0x57f   : > { %v2699_v59 = vpop.eup %2698 }
 0x580   : > { %v2701_v2 = vpop.eup %2700 }
 0x581   : > { %v1272_v53 = vpop.xlane.xlu0 %1271  ;;  %v2703_v3 = vpop.eup %2702  ;;  %v1569_v4 = vmul.f32 %v2701_v2, %v1342_v43  ;;  %v1877_v2 = vld [vmem:[#allocation10 + $0xf0] sm:$0xff] }
 0x582   : > { %2704 = vrcp.f32 %v1272_v53 }
 0x58f   : > { %v2705_v5 = vpop.eup %2704 }
 0x59f   : > { %v1415_v49 = vpop.f32.mrf.mxu1 }
 0x5a0   : > { %v1570_v10 = vmul.f32 %v2703_v3, %v1415_v49  ;;  %v1876_v3 = vld [vmem:[#allocation10 + $0xe8] sm:$0xff] }
 0x5a1   : > { %v2468_v50 = vpop.f32.mrf.mxu1 }
 0x5aa   : > { %v1488_v54 = vpop.f32.mrf.mxu0 }
 0x5ab   : > { %v1571_v0 = vmul.f32 %v2699_v59, %v1488_v54 }
 0x5ac   : > { %v2475_v55 = vpop.f32.mrf.mxu0 }
 0x5ad   : > { %v1573_v11 = vcombine.low %v1569_v4, %v1571_v0  ;;  %v1574_v12 = vcombine.high %v1569_v4, %v1571_v0  ;;  %v1878_v0 = vld [vmem:[#allocation10 + $0xf8] sm:$0xff]  ;;  %v1875_v4 = vld [vmem:[#allocation10 + $0xe0] sm:$0xff] }
 0x5ae   : > { %1891 = vmatprep.subr.mxu1 %v1878_v0  ;;  %v1979_v0 = vld [vmem:[#allocation11 + $0x38] sm:$0xff] }
 0x5af   : > { %v1581_v20 = vrot.slane %v1573_v11, %v1580_v6  ;;  %v1588_v21 = vrot.slane %v1574_v12, %v1580_v6  ;;  %1892 = vmatpush1.msra.mxu1 %v1877_v2  ;;  %v1994_v2 = vld [vmem:[#allocation11 + $0xb0] sm:$0xff] }
 0x5b0   : > { %1893 = vmatprep.subr.mxu1 %v1876_v3  ;;  %v1978_v3 = vld [vmem:[#allocation11 + $0x30] sm:$0xff] }
 0x5b1   : > { %1894 = vmatpush1.msra.mxu1 %v1875_v4  ;;  %v1993_v4 = vld [vmem:[#allocation11 + $0xa8] sm:$0xff] }
 0x5b7   : > { %v1561_v8 = vpop.f32.mrf.mxu1 }
 0x5b8   : > { %v1572_v13 = vmul.f32 %v2705_v5, %v1561_v8  ;;  %v1874_v5 = vld [vmem:[#allocation10 + $0xd8] sm:$0xff]  ;;  %v1872_v8 = vld [vmem:[#allocation10 + $0xc8] sm:$0xff] }
 0x5b9   : > { %v2482_v14 = vpop.f32.mrf.mxu1  ;;  %1895 = vmatprep.subr.mxu1 %v1874_v5  ;;  %v1977_v5 = vld [vmem:[#allocation11 + $0x28] sm:$0xff] }
 0x5ba   : > { %v1589_v15 = vcombine.low %v1570_v10, %v1572_v13  ;;  %v1590_v16 = vcombine.high %v1570_v10, %v1572_v13  ;;  %v1870_v13 = vld [vmem:[#allocation10 + $0xb8] sm:$0xff]  ;;  %v1869_v14 = vld [vmem:[#allocation10 + $0xb0] sm:$0xff] }
 0x5bc   : > { %v1597_v22 = vrot.slane %v1589_v15, %v1580_v6  ;;  %v1604_v24 = vrot.slane %v1590_v16, %v1580_v6  ;;  %v1868_v15 = vld [vmem:[#allocation10 + $0xa8] sm:$0xff]  ;;  %v1867_v16 = vld [vmem:[#allocation10 + $0xa0] sm:$0xff] }
 0x5be   : > { %v1605_v25 = vcombine.low %v1581_v20, %v1597_v22  ;;  %v1606_v26 = vcombine.high %v1581_v20, %v1597_v22  ;;  %v1621_v27 = vcombine.low %v1588_v21, %v1604_v24  ;;  %v1622_v18 = vcombine.high %v1588_v21, %v1604_v24  ;;  %v1865_v20 = vld [vmem:[#allocation10 + $0x90] sm:$0xff]  ;;  %v1864_v21 = vld [vmem:[#allocation10 + $0x88] sm:$0xff]  ;;  %v1863_v22 = vld [vmem:[#allocation10 + $0x80] sm:$0xff] }
 0x5bf   : > { %v1862_v24 = vld [vmem:[#allocation10 + $0x78] sm:$0xff] }
 0x5c0   : > { %v1613_v28 = vrot.slane %v1605_v25, %v1612_v17  ;;  %v1620_v29 = vrot.slane %v1606_v26, %v1612_v17  ;;  %v1629_v30 = vrot.slane %v1621_v27, %v1612_v17  ;;  %v1636_v31 = vrot.slane %v1622_v18, %v1612_v17  ;;  %v1861_v25 = vld [vmem:[#allocation10 + $0x70] sm:$0xff]  ;;  %v1860_v26 = vld [vmem:[#allocation10 + $0x68] sm:$0xff]  ;;  %v1859_v27 = vld [vmem:[#allocation10 + $0x60] sm:$0xff] }
 0x5c1   : > { %v1858_v18 = vld [vmem:[#allocation10 + $0x58] sm:$0xff] }
 0x5c2   : > { %v1641_v32 = vcombine.low %v1613_v28, %v1620_v29  ;;  %v2263_v33 = vcombine.high %v1613_v28, %v1620_v29  ;;  %v1657_v34 = vcombine.low %v1629_v30, %v1636_v31  ;;  %v2264_v35 = vcombine.high %v1629_v30, %v1636_v31  ;;  %v1855_v28 = vld [vmem:[#allocation10 + $0x40] sm:$0xff]  ;;  %v1854_v29 = vld [vmem:[#allocation10 + $0x38] sm:$0xff]  ;;  %v1853_v30 = vld [vmem:[#allocation10 + $0x30] sm:$0xff] }
 0x5c3   : > { %v1852_v31 = vld [vmem:[#allocation10 + $0x28] sm:$0xff] }
 0x5c4   : > { %v1648_v37 = vrot.slane %v1641_v32, %v1580_v6  ;;  %v1656_v38 = vrot.slane %v2263_v33, %v1580_v6  ;;  %v1664_v39 = vrot.slane %v1657_v34, %v1580_v6  ;;  %v1672_v40 = vrot.slane %v2264_v35, %v1580_v6  ;;  %v1873_v6 = vld [vmem:[#allocation10 + $0xd0] sm:$0xff]  ;;  %v1851_v32 = vld [vmem:[#allocation10 + $0x20] sm:$0xff]  ;;  %v1850_v33 = vld [vmem:[#allocation10 + $0x18] sm:$0xff] }
 0x5c5   : > { %1896 = vmatpush1.msra.mxu1 %v1873_v6  ;;  %v1849_v34 = vld [vmem:[#allocation10 + $0x10] sm:$0xff]  ;;  %v1848_v35 = vld [vmem:[#allocation10 + $0x8] sm:$0xff]  ;;  %v1992_v6 = vld [vmem:[#allocation11 + $0xa0] sm:$0xff] }
 0x5c6   : > { %v1674_v41 = vcombine.high %v1648_v37, %v1656_v38  ;;  %v1690_v42 = vcombine.high %v1664_v39, %v1672_v40  ;;  %v1673_v43 = vcombine.low %v1648_v37, %v1656_v38  ;;  %v1689_v44 = vcombine.low %v1664_v39, %v1672_v40  ;;  %1897 = vmatprep.subr.mxu1 %v1872_v8  ;;  %v2003_v37 = vld [vmem:[#allocation11 + $0xf8] sm:$0xff]  ;;  %v2002_v39 = vld [vmem:[#allocation11 + $0xf0] sm:$0xff]  ;;  %v1976_v8 = vld [vmem:[#allocation11 + $0x20] sm:$0xff] }
 0x5c7   : > { %1898 = vmatpush1.msra.mxu1 %v1871_v9  ;;  %v1987_v38 = vld [vmem:[#allocation11 + $0x78] sm:$0xff]  ;;  %2341 = vmatprep.subr.mxu0 %v2003_v37  ;;  %v1986_v40 = vld [vmem:[#allocation11 + $0x70] sm:$0xff] }
 0x5c8   : > { %v1688_v45 = vrot.slane %v1674_v41, %v1612_v17  ;;  %v1704_v46 = vrot.slane %v1690_v42, %v1612_v17  ;;  %v1681_v47 = vrot.slane %v1673_v43, %v1612_v17  ;;  %v1697_v48 = vrot.slane %v1689_v44, %v1612_v17  ;;  %1899 = vmatprep.subr.mxu1 %v1870_v13  ;;  %v1866_v17 = vld [vmem:[#allocation10 + $0x98] sm:$0xff]  ;;  %v2001_v41 = vld [vmem:[#allocation11 + $0xe8] sm:$0xff] }
 0x5c9   : > { %1900 = vmatpush1.msra.mxu1 %v1869_v14  ;;  %v1985_v42 = vld [vmem:[#allocation11 + $0x68] sm:$0xff]  ;;  %v1991_v9 = vld [vmem:[#allocation11 + $0x98] sm:$0xff]  ;;  %v1988_v14 = vld [vmem:[#allocation11 + $0x80] sm:$0xff] }
 0x5ca   : > { %v1707_v49 = vcombine.low %v1688_v45, %v1704_v46  ;;  %v1706_v50 = vcombine.high %v1681_v47, %v1697_v48  ;;  %v1705_v51 = vcombine.low %v1681_v47, %v1697_v48  ;;  %v1708_v7 = vcombine.high %v1688_v45, %v1704_v46  ;;  %1901 = vmatprep.subr.mxu1 %v1868_v15  ;;  %v2266_v47 = vld [vmem:[%s3593_s10] ss:$0 sm:$0xff]  ;;  %v1973_v13 = vld [vmem:[#allocation11 + $0x8] sm:$0xff]  ;;  %v1972_v15 = vld [vmem:[#allocation11] sm:$0xff] }
 0x5cb   : > { %1902 = vmatpush1.msra.mxu1 %v1867_v16  ;;  %v1883_v16 = vsub.s32 0, %v3445_v61 }
 0x5cc   : > { %1714 = vrot.lane.b32.xlu0 %v1707_v49, %s3018_s5  ;;  %1710 = vrot.lane.b32.xlu1 %v1706_v50, %s3020_s16  ;;  %v2267_v49 = vld [vmem:[%s3594_s2] ss:$0 sm:$0xff]  ;;  %s2270_s5 = sshll.u32 %s3596_s15, 1 }
 0x5cd   : > { %1903 = vmatprep.subr.mxu1 %v1866_v17  ;;  %v1879_v17 = vld [vmem:[%s3595_s17] sm:$0x3]  ;;  %s2874_s17 = sshll.u32 %s3023_s30, 4  ;;  %s2875_s17 = int_to_ptr.vmem [resolvable:$false] %s2874_s17 }
 0x5ce   : > { %1904 = vmatpush1.msra.mxu1 %v1865_v20  ;;  %v1887_v20 = vsub.s32 1, %v3445_v61  ;;  %s2876_s15 = scalar_lea.vmem %s2875_s17, 256  ;;  %p2877_p2 = scmp.lt.s32.totalorder %s2100_s4, %s2875_s17 }
 0x5cf   : > { %1905 = vmatprep.subr.mxu1 %v1864_v21  ;;  %v1884_v21 = vrot.slane %v1879_v17, %v1883_v16 }
 0x5d0   : > { %1718 = vrot.lane.b32.xlu1 %v1708_v7, %s3019_s24  ;;  %1906 = vmatpush1.msra.mxu1 %v1863_v22  ;;  %v2000_v7 = vld [vmem:[#allocation11 + $0xe0] sm:$0xff]  ;;  %v1888_v22 = vrot.slane %v1879_v17, %v1887_v20  ;;  %s2095_s24 = sadd.s32 %s2986_s27, %s2270_s5  ;;  %s2870_s27 = scalar_lea.vmem %s2100_s4, 128 }
 0x5d1   : > { %1907 = vmatprep.subr.mxu1 %v1862_v24  ;;  %s2271_s9 = sshll.u32 %s2095_s24, 7  ;;  %p2871_p1 = scmp.ne.s32.totalorder %s2100_s4, %s2870_s27 }
 0x5d2   : > { %1908 = vmatpush1.msra.mxu1 %v1861_v25  ;;  %s2097_s2 = scalar_lea.hbm %s3598_s14, %s2271_s9  ;;  %p2878_p9 = scmp.lt.s32.totalorder %s2876_s15, %s2870_s27 }
 0x5d3   : > { %1909 = vmatprep.subr.mxu1 %v1860_v26  ;;  %p2872_p4 = pnand %p2871_p1, %p3256_p7 }
 0x5d4   : > { %1910 = vmatpush1.msra.mxu1 %v1859_v27  ;;  %p2879_p12 = por %p2878_p9, %p2877_p2 }
 0x5d5   : > { %1911 = vmatprep.subr.mxu1 %v1858_v18  ;;  %p2873_p10 = pneg %p2872_p4 }
 0x5d6   : > { %1912 = vmatpush1.msra.mxu1 %v1857_v19 }
 0x5d7   : > { %1913 = vmatprep.subr.mxu1 %v1856_v23  ;;  %p2880_p13 = pnand %p2879_p12, %p2873_p10 }
 0x5d8   : > { %1914 = vmatpush1.msra.mxu1 %v1855_v28 }
 0x5d9   : > { %1915 = vmatprep.subr.mxu1 %v1854_v29 }
 0x5da   : > { %1916 = vmatpush1.msra.mxu1 %v1853_v30 }
 0x5db   : > { %1917 = vmatprep.subr.mxu1 %v1852_v31 }
 0x5dc   : > { %1918 = vmatpush1.msra.mxu1 %v1851_v32 }
 0x5dd   : > { %1919 = vmatprep.subr.mxu1 %v1850_v33 }
 0x5de   : > { %1920 = vmatpush1.msra.mxu1 %v1849_v34 }
 0x5df   : > { %1921 = vmatprep.subr.mxu1 %v1848_v35  ;;  %v2268_v35 = vld [vmem:[%s3597_s11] ss:$0 sm:$0xff] }
 0x5e0   : > { %1922 = vmatpush1.msra.mxu1 %v1847_v36 }
 0x63e   : > { %v1711_v52 = vpop.permute.xlu1 %1710  ;;  %v1715_v53 = vpop.permute.xlu0 %1714 }
 0x63f   : > { %v1721_v54 = vsel %vm947_vm1, %v1705_v51, %v1711_v52  ;;  %v1984_v52 = vld [vmem:[#allocation11 + $0x60] sm:$0xff] }
 0x640   : > { %v1723_v56 = vsel %vm1722_vm3, %v1721_v54, %v1715_v53  ;;  %v1999_v53 = vld [vmem:[#allocation11 + $0xd8] sm:$0xff] }
 0x641   : > { %v1983_v54 = vld [vmem:[#allocation11 + $0x58] sm:$0xff] }
 0x642   : > { %v1719_v55 = vpop.permute.xlu1 %1718 }
 0x643   : > { %v1725_v57 = vsel %vm1724_vm4, %v1723_v56, %v1719_v55  ;;  %v1998_v55 = vld [vmem:[#allocation11 + $0xd0] sm:$0xff] }
 0x644   : > { %2516 = vmatmul.mubr.f32.vlgmr.msra.gmra.mxu0 %v1725_v57  ;;  %v1982_v56 = vld [vmem:[#allocation11 + $0x50] sm:$0xff]  ;;  %v1997_v57 = vld [vmem:[#allocation11 + $0xc8] sm:$0xff] }
 0x645   : > { %2342 = vmatpush3.msra.mxu0 %v1987_v38 }
 0x646   : > { %2343 = vmatprep.subr.mxu0 %v2002_v39 }
 0x647   : > { %2344 = vmatpush3.msra.mxu0 %v1986_v40 }
 0x648   : > { %2345 = vmatprep.subr.mxu0 %v2001_v41 }
 0x649   : > { %2346 = vmatpush3.msra.mxu0 %v1985_v42 }
 0x64a   : > { %2347 = vmatprep.subr.mxu0 %v2000_v7 }
 0x64b   : > { %2348 = vmatpush3.msra.mxu0 %v1984_v52 }
 0x64c   : > { %2349 = vmatprep.subr.mxu0 %v1999_v53 }
 0x64d   : > { %2350 = vmatpush3.msra.mxu0 %v1983_v54 }
 0x64e   : > { %2351 = vmatprep.subr.mxu0 %v1998_v55 }
 0x64f   : > { %2352 = vmatpush3.msra.mxu0 %v1982_v56 }
 0x650   : > { %2353 = vmatprep.subr.mxu0 %v1997_v57 }
 0x704   : > { %v1815_v59 = vpop.f32.mrf.mxu0 }
 0x705   : > { %v1816_v60 = vadd.f32 %v2265_v58, %v1815_v59  ;;  %v1981_v58 = vld [vmem:[#allocation11 + $0x48] sm:$0xff]  ;;  %v1996_v59 = vld [vmem:[#allocation11 + $0xc0] sm:$0xff] }
 0x706   : > { %v2517_v62 = vpop.f32.mrf.mxu0  ;;  %2354 = vmatpush3.msra.mxu0 %v1981_v58 }
 0x707   : > { %v3459_v63 = vadd.f32 %v1816_v60, %v3309_v1  ;;  %2355 = vmatprep.subr.mxu0 %v1996_v59  ;;  %v1980_v60 = vld [vmem:[#allocation11 + $0x40] sm:$0xff]  ;;  %v1995_v62 = vld [vmem:[#allocation11 + $0xb8] sm:$0xff] }
 0x708   : > { %2356 = vmatpush3.msra.mxu0 %v1980_v60 }
 0x709   : > { %1822 = vadd.xlane.f32.xlu1 %v3459_v63  ;;  %2357 = vmatprep.subr.mxu0 %v1995_v62 }
 0x70a   : > { %2358 = vmatpush3.msra.mxu0 %v1979_v0 }
 0x70b   : > { %2359 = vmatprep.subr.mxu0 %v1994_v2 }
 0x70c   : > { %2360 = vmatpush3.msra.mxu0 %v1978_v3 }
 0x70d   : > { %2361 = vmatprep.subr.mxu0 %v1993_v4 }
 0x70e   : > { %2362 = vmatpush3.msra.mxu0 %v1977_v5 }
 0x70f   : > { %2363 = vmatprep.subr.mxu0 %v1992_v6 }
 0x710   : > { %2364 = vmatpush3.msra.mxu0 %v1976_v8 }
 0x711   : > { %2365 = vmatprep.subr.mxu0 %v1991_v9 }
 0x792   : > { %v1823_v1 = vpop.xlane.xlu1 %1822 }
 0x793   : > { %v1824_v10 = vmul.f32 0.0078125, %v1823_v1  ;;  %v1975_v1 = vld [vmem:[#allocation11 + $0x18] sm:$0xff] }
 0x794   : > { %2366 = vmatpush3.msra.mxu0 %v1975_v1 }
 0x795   : > { %v3463_v11 = vsub.f32 %v3459_v63, %v1824_v10  ;;  %v1990_v10 = vld [vmem:[#allocation11 + $0x90] sm:$0xff] }
 0x796   : > { %2367 = vmatprep.subr.mxu0 %v1990_v10 }
 0x797   : > { %v1826_v12 = vmul.f32 %v3463_v11, %v3463_v11 }
 0x799   : > { %1827 = vadd.xlane.f32.xlu0 %v1826_v12  ;;  %v1989_v12 = vld [vmem:[#allocation11 + $0x88] sm:$0xff] }
 0x822   : > { %v1828_v43 = vpop.xlane.xlu0 %1827 }
 0x823   : > { %v1829_v44 = vmul.f32 0.0078125, %v1828_v43 }
 0x825   : > { %v1830_v45 = vadd.f32 1e-05, %v1829_v44 }
 0x827   : > { %2706 = vrsqrt.f32 %v1830_v45 }
 0x834   : > { %v2707_v46 = vpop.eup %2706 }
 0x835   : > { %v1832_v48 = vmul.f32 %v2707_v46, %v3463_v11  ;;  %v1974_v11 = vld [vmem:[#allocation11 + $0x10] sm:$0xff] }
 0x836   : > { %2368 = vmatpush3.msra.mxu0 %v1974_v11 }
 0x837   : > { %v1839_v50 = vmul.f32 %v2266_v47, %v1832_v48  ;;  %2369 = vmatprep.subr.mxu0 %v1989_v12 }
 0x838   : > { %2370 = vmatpush3.msra.mxu0 %v1973_v13 }
 0x839   : > { %v1846_v51 = vadd.f32 %v2267_v49, %v1839_v50  ;;  %2371 = vmatprep.subr.mxu0 %v1988_v14 }
 0x83a   : > { %2372 = vmatpush3.msra.mxu0 %v1972_v15 }
 0x83b   : > { %1956 = vmatmul.mubr.f32.vlgmr.msra.gmra.mxu1 %v1846_v51 }
 0x8fb   : > { %v1957_v24 = vpop.f32.mrf.mxu1 }
 0x8fc   : > { %v1958_v25 = vadd.f32 %v1957_v24, %v1884_v21 }
 0x8fd   : > { %v1959_v26 = vpop.f32.mrf.mxu1 }
 0x8fe   : > { %v1964_v27 = vmul.f32 0.70710677, %v1958_v25  ;;  %v1960_v18 = vadd.f32 %v1959_v26, %v1888_v22  ;;  %v1962_v32 = vmul.f32 0.5, %v1958_v25 }
 0x900   : > { %2708 = verf.f32 %v1964_v27  ;;  %v1965_v19 = vmul.f32 0.70710677, %v1960_v18  ;;  %v1963_v30 = vmul.f32 0.5, %v1960_v18 }
 0x902   : > { %2710 = verf.f32 %v1965_v19 }
 0x90d   : > { %v2709_v23 = vpop.eup %2708 }
 0x90e   : > { %v1968_v29 = vadd.f32 1.0, %v2709_v23 }
 0x90f   : > { %v2711_v28 = vpop.eup %2710 }
 0x910   : > { %v1969_v31 = vadd.f32 1.0, %v2711_v28  ;;  %v1970_v33 = vmul.f32 %v1968_v29, %v1962_v32 }
 0x912   : > { %v1971_v61 = vmul.f32 %v1969_v31, %v1963_v30 }
 0x914   : > { %2075 = vmatprep.mubr.f32.mxu0 %v1971_v61 }
 0x915   : > { %2076 = vmatmul.mubr.f32.vlgmr.msra.gmra.mxu0 %v1970_v33 }
 0x9d5   : > { %v2373_v34 = vpop.f32.mrf.mxu0 }
 0x9d7   : > { %v2374_v36 = vpop.f32.mrf.mxu0 }
 0x9d8   : > { %v2375_v37 = vadd.f32 %v2374_v36, %v2373_v34 }
 0x9da   : > { %v2078_v38 = vadd.f32 %v2375_v37, %v2268_v35 }
 0x9dc   : > { %v2081_v39 = vadd.f32 %v2078_v38, %v3459_v63 }
 0x9de   : > { %2082 = vst [vmem:[%s516_s28] sm:$0xff] %v2081_v39 }
 0x9df   : > { %2883 = shalt.err (!%p2880_p13)
}
 0x9e0   : > { %s2884_s19 = scalar_lea.hbm %s2097_s2, 128  ;;  %s2888_s24 = scalar_lea.hbm %s3598_s14, 512 }
 0x9e1   : > { %p2885_p0 = scmp.ne.s32.totalorder %s2097_s2, %s2884_s19  ;;  %p2889_p5 = scmp.lt.s32.totalorder %s2097_s2, %s3598_s14 }
 0x9e2   : > { %p2890_p8 = scmp.lt.s32.totalorder %s2888_s24, %s2884_s19 }
 0x9e3   : > { %p2886_p3 = pnand %p2885_p0, %p3256_p7 }
 0x9e4   : > { %p2891_p1 = por %p2890_p8, %p2889_p5 }
 0x9e5   : > { %p2887_p11 = pneg %p2886_p3 }
 0x9e7   : > { %p2892_p4 = pnand %p2891_p1, %p2887_p11 }
 0x9e9   : > { %2895 = shalt.err (!%p2892_p4)
}
 0x9ea   : > { %2540 = dma.vmem_to_hbm [thread:$0]  (%p3256_p7), %s2100_s4, 128, %s2097_s2, %s2084_s1  }
 0x9eb PF: > { %p2577_p10 = scmp.ge.s32.totalorder %s3002_s13, 2  ;;  %s2111_s11 = sand.u32 1, %s2962_s21  }
 0x9ec   : > { %s2112_s9 = scalar_lea.sflag [#allocation4], %s2111_s11 }
 0x9ed   : > { %p2563_p2 = pnand %p2577_p10, %p3269_p6 }
 0x9ef   : > { %p2564_p9 = pneg %p2563_p2 }
 0x9f1   : > { %2957 = dma.done.wait (%p2564_p9), %s2112_s9, 128  }
 0x9f2   : > { %2959 = vsyncadd (%p2564_p9), %s2112_s9, 4294967168  ;;  %s31_s13 = sadd.s32 1, %s3002_s13   ;;  %s3599_s28 = sld [smem:[#allocation20_spill]] }
 0x9f3   : > { %p28_p12 = scmp.ge.s32.totalorder %s31_s13, 6   ;;  %s3600_s20 = sld [smem:[#allocation21_spill]] }
 0x9f4   : > { %s3601_s30 = sld [smem:[#allocation22_spill]]  ;;  %s3602_s21 = smov %s2966_s22 }
 0x9f5   : > { %s3603_s22 = smov %s2970_s23  ;;  %s3604_s23 = smov %s3264_s7 }
 0x9f6   : > { %s3605_s24 = smov %s2978_s25  ;;  %s3606_s25 = smov %s2982_s26 }
 0x9f7   : > { %s3607_s26 = smov %s3261_s18  ;;  %s3608_s27 = smov %s2994_s29 }
 0x9f8   :  { %30 = sbr.rel (!%p28_p12) target bundleno = 25 (0x19), region = 134 }
 0x9f9   : > { %s3609_s29 = smov %s3600_s20 }
 0x9fd   :  { %2117 = vsyncpa [#allocation3], 1 }
 0x9fe   :  { %2119 = vsyncpa [#allocation3 + $0x1], 1 }
 0x9ff   :  { %2120 = vsyncpa [#allocation6], 1 }
 0xa00   :  { %2121 = vsyncpa [#allocation9], 1 }
 0xa01   :  { %2122 = vsyncpa [#allocation12], 1 }
 0xa02   :  { %2123 = vsyncpa [#allocation4], 1 }
 0xa03   :  { %2125 = vsyncpa [#allocation4 + $0x1], 1 }

</bundles_post_ra>
